<compile_context>
chip_gen: v7x
topology: tpu7x:2x2x1
jax: 0.10.0
libtpu: 0.0.40
codegen_flags: <defaults>
</compile_context>

<pallas_src>
import functools

import jax
import jax.numpy as jnp
from jax.experimental import pallas as pl
from jax.experimental.pallas import tpu as pltpu


# ------------------------------ tiling helpers ------------------------------

def _pick_tile(dim, candidates):
    """Largest candidate that evenly divides `dim`, else the full dim
    (a block equal to the full array dim is always layout-legal)."""
    for c in candidates:
        if dim >= c and dim % c == 0:
            return c
    return dim


_ROW_TILES = (256, 128, 64, 32, 16, 8)      # sublane-friendly (multiples of 8)
_LANE_TILES = (1024, 512, 256, 128)         # lane-friendly (multiples of 128)


# ------------------------------ Pallas kernels ------------------------------

def _mm_bias_acc_kernel(x_ref, w_ref, b_ref, o_ref, acc_ref):
    # Tiled o = x @ w + b with K-reduction accumulator in VMEM.
    @pl.when(pl.program_id(2) == 0)
    def _():
        acc_ref[...] = jnp.zeros_like(acc_ref)

    acc_ref[...] += jnp.dot(x_ref[...].astype(w_ref.dtype), w_ref[...],
                            preferred_element_type=jnp.float32)

    @pl.when(pl.program_id(2) == pl.num_programs(2) - 1)
    def _():
        o_ref[...] = (acc_ref[...] + b_ref[...]).astype(o_ref.dtype)


def _layernorm_kernel(x_ref, g_ref, b_ref, o_ref):
    x = x_ref[...].astype(jnp.float32)
    mu = jnp.mean(x, axis=-1, keepdims=True)
    var = jnp.mean(jnp.square(x - mu), axis=-1, keepdims=True)
    y = (x - mu) * jax.lax.rsqrt(var + 1e-5)
    o_ref[...] = (y * g_ref[...] + b_ref[...]).astype(o_ref.dtype)


def _ln_mm_bias_kernel(x_ref, g_ref, b_ref, w_ref, bias_ref, o_ref):
    # Fused LayerNorm prologue + matmul + bias (LN math in f32, matmul bf16).
    x = x_ref[...].astype(jnp.float32)
    mu = jnp.mean(x, axis=-1, keepdims=True)
    var = jnp.mean(jnp.square(x - mu), axis=-1, keepdims=True)
    h = (x - mu) * jax.lax.rsqrt(var + 1e-5)
    h = h * g_ref[...] + b_ref[...]
    y = jnp.dot(h.astype(w_ref.dtype), w_ref[...],
                preferred_element_type=jnp.float32)
    o_ref[...] = (y + bias_ref[...]).astype(o_ref.dtype)


def _ln_mlp_residual_kernel(x_ref, g_ref, b_ref, w1_ref, b1_ref,
                            w2_ref, b2_ref, o_ref):
    # Fused LN2 + MLP(w1, QuickGELU, w2) + residual add.
    # The [tm, 4*width] intermediate never leaves VMEM.
    x = x_ref[...].astype(jnp.float32)
    mu = jnp.mean(x, axis=-1, keepdims=True)
    var = jnp.mean(jnp.square(x - mu), axis=-1, keepdims=True)
    h = (x - mu) * jax.lax.rsqrt(var + 1e-5)
    h = h * g_ref[...] + b_ref[...]
    h1 = jnp.dot(h.astype(w1_ref.dtype), w1_ref[...],
                 preferred_element_type=jnp.float32) + b1_ref[...]
    h1 = h1 * jax.nn.sigmoid(1.702 * h1)                    # QuickGELU (f32)
    h2 = jnp.dot(h1.astype(w2_ref.dtype), w2_ref[...],
                 preferred_element_type=jnp.float32) + b2_ref[...]
    o_ref[...] = (x + h2).astype(o_ref.dtype)


def _attn_out_residual_kernel(qkv_ref, wo_ref, bo_ref, xres_ref, o_ref, *,
                              heads, scale):
    # Per-batch multi-head attention + out-projection + residual.
    # Heads are split from the fused QKV tile in VMEM (no HBM transposes).
    # Full [T, T] scores are fine at small/medium T; for production T use an
    # online-softmax (flash) variant with a KV grid axis.
    T, D3 = qkv_ref.shape[1], qkv_ref.shape[2]
    D = D3 // 3
    Dh = D // heads
    qkv = qkv_ref[0]                                         # [T, 3D] bf16
    outs = []
    for h in range(heads):                                   # static unroll
        qh = qkv[:, h * Dh:(h + 1) * Dh].astype(jnp.float32) * scale
        kh = qkv[:, D + h * Dh:D + (h + 1) * Dh].astype(jnp.float32)
        vh = qkv[:, 2 * D + h * Dh:2 * D + (h + 1) * Dh].astype(jnp.float32)
        s = jax.lax.dot_general(qh, kh, (((1,), (1,)), ((), ())),
                                preferred_element_type=jnp.float32)   # [T, T]
        s = s - jnp.max(s, axis=-1, keepdims=True)
        p = jnp.exp(s)
        p = p * pl.reciprocal(jnp.sum(p, axis=-1, keepdims=True), approx=True)
        outs.append(jnp.dot(p, vh, preferred_element_type=jnp.float32))
    o = jnp.concatenate(outs, axis=-1)                       # [T, D]
    y = jnp.dot(o.astype(wo_ref.dtype), wo_ref[...],
                preferred_element_type=jnp.float32)
    o_ref[0] = (y + bo_ref[...] + xres_ref[0].astype(jnp.float32)
                ).astype(o_ref.dtype)


# ------------------------------ kernel wrappers ------------------------------

def matmul_bias(x, w, b, out_dtype=jnp.float32):
    """Tiled x @ w + b with (M, N, K) grid, f32 VMEM accumulator."""
    M, K = x.shape
    _, N = w.shape
    tm = _pick_tile(M, _ROW_TILES)
    tn = _pick_tile(N, _LANE_TILES)
    tk = _pick_tile(K, _LANE_TILES)
    grid = (M // tm, N // tn, K // tk)
    bytes_acc = (x.size * x.dtype.itemsize + w.size * w.dtype.itemsize
                 + M * N * jnp.dtype(out_dtype).itemsize)
    return pl.pallas_call(
        _mm_bias_acc_kernel,
        out_shape=jax.ShapeDtypeStruct((M, N), out_dtype),
        grid_spec=pltpu.PrefetchScalarGridSpec(
            num_scalar_prefetch=0, grid=grid,
            in_specs=[
                pl.BlockSpec((tm, tk), lambda i, j, k: (i, k)),
                pl.BlockSpec((tk, tn), lambda i, j, k: (k, j)),
                pl.BlockSpec((1, tn), lambda i, j, k: (0, j)),
            ],
            out_specs=pl.BlockSpec((tm, tn), lambda i, j, k: (i, j)),
            scratch_shapes=[pltpu.VMEM((tm, tn), jnp.float32)],
        ),
        compiler_params=pltpu.CompilerParams(
            dimension_semantics=("parallel", "parallel", "arbitrary")),
        cost_estimate=pl.CostEstimate(flops=2 * M * N * K, transcendentals=0,
                                      bytes_accessed=bytes_acc),
    )(x, w, b.reshape(1, N))


def layernorm(x, g, b):
    """Row-wise LayerNorm, gridded over rows."""
    M, D = x.shape
    tm = _pick_tile(M, _ROW_TILES)
    return pl.pallas_call(
        _layernorm_kernel,
        out_shape=jax.ShapeDtypeStruct((M, D), x.dtype),
        grid_spec=pltpu.PrefetchScalarGridSpec(
            num_scalar_prefetch=0, grid=(M // tm,),
            in_specs=[
                pl.BlockSpec((tm, D), lambda i: (i, 0)),
                pl.BlockSpec((1, D), lambda i: (0, 0)),
                pl.BlockSpec((1, D), lambda i: (0, 0)),
            ],
            out_specs=pl.BlockSpec((tm, D), lambda i: (i, 0)),
        ),
        compiler_params=pltpu.CompilerParams(dimension_semantics=("parallel",)),
    )(x, g.reshape(1, D), b.reshape(1, D))


def ln_matmul_bias(x, g, b_ln, w, b, out_dtype):
    """Fused LayerNorm + (LN(x) @ w + b), gridded over rows (weight resident)."""
    M, D = x.shape
    N = w.shape[1]
    tm = _pick_tile(M, _ROW_TILES)
    bytes_acc = (x.size * x.dtype.itemsize + w.size * w.dtype.itemsize
                 + M * N * jnp.dtype(out_dtype).itemsize)
    return pl.pallas_call(
        _ln_mm_bias_kernel,
        out_shape=jax.ShapeDtypeStruct((M, N), out_dtype),
        grid_spec=pltpu.PrefetchScalarGridSpec(
            num_scalar_prefetch=0, grid=(M // tm,),
            in_specs=[
                pl.BlockSpec((tm, D), lambda i: (i, 0)),
                pl.BlockSpec((1, D), lambda i: (0, 0)),
                pl.BlockSpec((1, D), lambda i: (0, 0)),
                pl.BlockSpec((D, N), lambda i: (0, 0)),
                pl.BlockSpec((1, N), lambda i: (0, 0)),
            ],
            out_specs=pl.BlockSpec((tm, N), lambda i: (i, 0)),
        ),
        compiler_params=pltpu.CompilerParams(dimension_semantics=("parallel",)),
        cost_estimate=pl.CostEstimate(flops=2 * M * D * N + 8 * M * D,
                                      transcendentals=M,
                                      bytes_accessed=bytes_acc),
    )(x, g.reshape(1, D), b_ln.reshape(1, D), w, b.reshape(1, N))


def ln_mlp_residual(x, g, b_ln, w1, b1, w2, b2):
    """Fused LN2 + MLP (w1 -> QuickGELU -> w2) + residual add."""
    M, D = x.shape
    Dm = w1.shape[1]
    tm = _pick_tile(M, _ROW_TILES)
    bytes_acc = (2 * x.size * x.dtype.itemsize
                 + (w1.size + w2.size) * w1.dtype.itemsize)
    return pl.pallas_call(
        _ln_mlp_residual_kernel,
        out_shape=jax.ShapeDtypeStruct((M, D), x.dtype),
        grid_spec=pltpu.PrefetchScalarGridSpec(
            num_scalar_prefetch=0, grid=(M // tm,),
            in_specs=[
                pl.BlockSpec((tm, D), lambda i: (i, 0)),
                pl.BlockSpec((1, D), lambda i: (0, 0)),
                pl.BlockSpec((1, D), lambda i: (0, 0)),
                pl.BlockSpec((D, Dm), lambda i: (0, 0)),
                pl.BlockSpec((1, Dm), lambda i: (0, 0)),
                pl.BlockSpec((Dm, D), lambda i: (0, 0)),
                pl.BlockSpec((1, D), lambda i: (0, 0)),
            ],
            out_specs=pl.BlockSpec((tm, D), lambda i: (i, 0)),
        ),
        compiler_params=pltpu.CompilerParams(dimension_semantics=("parallel",)),
        cost_estimate=pl.CostEstimate(flops=4 * M * D * Dm,
                                      transcendentals=M * Dm,
                                      bytes_accessed=bytes_acc),
    )(x, g.reshape(1, D), b_ln.reshape(1, D),
      w1, b1.reshape(1, Dm), w2, b2.reshape(1, D))


def attn_out_residual(qkv, wo, bo, x_res, *, heads, scale):
    """Per-batch MHA + out-projection + residual; grid over batch."""
    B, T, D3 = qkv.shape
    D = D3 // 3
    kernel = functools.partial(_attn_out_residual_kernel,
                               heads=heads, scale=scale)
    bytes_acc = (qkv.size * qkv.dtype.itemsize
                 + 2 * x_res.size * x_res.dtype.itemsize
                 + wo.size * wo.dtype.itemsize)
    return pl.pallas_call(
        kernel,
        out_shape=jax.ShapeDtypeStruct((B, T, D), x_res.dtype),
        grid_spec=pltpu.PrefetchScalarGridSpec(
            num_scalar_prefetch=0, grid=(B,),
            in_specs=[
                pl.BlockSpec((1, T, D3), lambda b: (b, 0, 0)),
                pl.BlockSpec((D, D), lambda b: (0, 0)),
                pl.BlockSpec((1, D), lambda b: (0, 0)),
                pl.BlockSpec((1, T, D), lambda b: (b, 0, 0)),
            ],
            out_specs=pl.BlockSpec((1, T, D), lambda b: (b, 0, 0)),
        ),
        compiler_params=pltpu.CompilerParams(dimension_semantics=("parallel",)),
        cost_estimate=pl.CostEstimate(
            flops=4 * B * T * T * D + 2 * B * T * D * D,
            transcendentals=B * heads * T * T,
            bytes_accessed=bytes_acc),
    )(qkv, wo, bo.reshape(1, D), x_res)


# ------------------------------ model definition -----------------------------

def init_params(key, *, channels, patch, width, heads, layers, grid, out_dim):
    del heads
    n_tok = grid * grid + 1
    ks = iter(jax.random.split(key, 8 + 8 * layers))
    s = 0.02

    def nrm(shape, dtype=jnp.float32):
        return (s * jax.random.normal(next(ks), shape, jnp.float32)).astype(dtype)

    conv_w = nrm((width, channels, patch, patch))            # PyTorch conv1 layout
    params = {
        # pre-reshaped to a [C*P*P, width] bf16 matmul operand
        "conv_w": conv_w.reshape(width, channels * patch * patch).T
                        .astype(jnp.bfloat16),
        "conv_b": jnp.zeros((width,), jnp.float32),
        "cls": nrm((width,)),
        "pos": nrm((n_tok, width)),
        "ln_pre_g": jnp.ones((width,), jnp.float32),
        "ln_pre_b": jnp.zeros((width,), jnp.float32),
        "ln_post_g": jnp.ones((width,), jnp.float32),
        "ln_post_b": jnp.zeros((width,), jnp.float32),
        "proj": nrm((width, out_dim), jnp.bfloat16),
        "blocks": [],
    }
    for _ in range(layers):
        blk = {
            "ln1_g": jnp.ones((width,), jnp.float32),
            "ln1_b": jnp.zeros((width,), jnp.float32),
            # fused QKV projection: one [width, 3*width] weight (q | k | v)
            "wqkv": nrm((width, 3 * width), jnp.bfloat16),
            "bqkv": jnp.zeros((3 * width,), jnp.float32),
            "wo": nrm((width, width), jnp.bfloat16),
            "bo": jnp.zeros((width,), jnp.float32),
            "ln2_g": jnp.ones((width,), jnp.float32),
            "ln2_b": jnp.zeros((width,), jnp.float32),
            "w1": nrm((width, 4 * width), jnp.bfloat16),
            "b1": jnp.zeros((4 * width,), jnp.float32),
            "w2": nrm((4 * width, width), jnp.bfloat16),
            "b2": jnp.zeros((width,), jnp.float32),
        }
        params["blocks"].append(blk)
    return params


def encode_image(params, image, *, patch, width, heads):
    """image: [B, C, H, W] float32 (NCHW, PyTorch convention)."""
    B, C, H, W = image.shape
    nH, nW = H // patch, W // patch
    n_patches = nH * nW
    T = n_patches + 1
    head_dim = width // heads
    scale = 1.0 / (head_dim ** 0.5)

    # --- patch embedding: conv(kernel=stride=patch) == tiled patch matmul ---
    x = image.reshape(B, C, nH, patch, nW, patch)
    x = jnp.transpose(x, (0, 2, 4, 1, 3, 5))                 # [B,nH,nW,C,P,P]
    x = x.reshape(B * n_patches, C * patch * patch).astype(jnp.bfloat16)
    x = matmul_bias(x, params["conv_w"], params["conv_b"], out_dtype=jnp.float32)
    x = x.reshape(B, n_patches, width)

    # --- class token + positional embedding (residual stream stays f32) ---
    cls = jnp.broadcast_to(params["cls"], (B, 1, width))
    x = jnp.concatenate([cls, x], axis=1) + params["pos"][None, :, :]

    # --- pre-LN ---
    x = layernorm(x.reshape(B * T, width),
                  params["ln_pre_g"], params["ln_pre_b"]).reshape(B, T, width)

    # --- transformer blocks: 3 fused kernels per layer ---
    for blk in params["blocks"]:
        qkv = ln_matmul_bias(x.reshape(B * T, width), blk["ln1_g"], blk["ln1_b"],
                             blk["wqkv"], blk["bqkv"], out_dtype=jnp.bfloat16)
        x = attn_out_residual(qkv.reshape(B, T, 3 * width), blk["wo"], blk["bo"],
                              x, heads=heads, scale=scale)
        x = ln_mlp_residual(x.reshape(B * T, width), blk["ln2_g"], blk["ln2_b"],
                            blk["w1"], blk["b1"], blk["w2"], blk["b2"]
                            ).reshape(B, T, width)

    # --- post-LN on class token fused with output projection ---
    feat = ln_matmul_bias(x[:, 0, :], params["ln_post_g"], params["ln_post_b"],
                          params["proj"],
                          jnp.zeros((params["proj"].shape[1],), jnp.float32),
                          out_dtype=jnp.float32)
    return feat                                              # [B, out_dim]


# ----------------------------------- main ------------------------------------

if __name__ == "__main__":
    B, C, HW = 2, 3, 16
    PATCH, WIDTH, HEADS, LAYERS, OUT_DIM = 8, 32, 2, 2, 16
    GRID = HW // PATCH

    key = jax.random.PRNGKey(0)
    k_img, k_par = jax.random.split(key)
    image = jax.random.normal(k_img, (B, C, HW, HW), jnp.float32)

    params = init_params(k_par, channels=C, patch=PATCH, width=WIDTH,
                         heads=HEADS, layers=LAYERS, grid=GRID,
                         out_dim=OUT_DIM)

    encode = jax.jit(functools.partial(encode_image, patch=PATCH, width=WIDTH,
                                       heads=HEADS))
    out = jax.block_until_ready(encode(params, image))
    assert out.shape == (B, OUT_DIM) and out.dtype == jnp.float32
    print("KERNEL_OK")
</pallas_src>

<mosaic_0001>
module attributes {stable_mosaic.version = 11 : i64} {
  func.func @_mm_bias_acc_kernel(%arg0: i32, %arg1: i32, %arg2: i32, %arg3: memref<8x192xbf16, #tpu.memory_space<vmem>>, %arg4: memref<192x32xbf16, #tpu.memory_space<vmem>>, %arg5: memref<1x32xf32, #tpu.memory_space<vmem>>, %arg6: memref<8x32xf32, #tpu.memory_space<vmem>>, %arg7: memref<8x32xf32, #tpu.memory_space<vmem>>) attributes {dimension_semantics = [#tpu.dimension_semantics<parallel>, #tpu.dimension_semantics<parallel>, #tpu.dimension_semantics<arbitrary>], iteration_bounds = array<i64: 1, 1, 1>, scalar_prefetch = 0 : i64, scratch_operands = 1 : i64, tpu.core_type = #tpu.core_type<tc>, window_params = [{transform_indices = @transform_0, window_bounds = array<i64: 8, 192>}, {transform_indices = @transform_1, window_bounds = array<i64: 192, 32>}, {transform_indices = @transform_2, window_bounds = array<i64: 1, 32>}, {transform_indices = @transform_3, window_bounds = array<i64: 8, 32>}]} {
    %c0_i32 = arith.constant 0 : i32
    %0 = arith.cmpi eq, %arg2, %c0_i32 : i32
    %1 = arith.extui %0 : i1 to i32
    %c0_i32_0 = arith.constant 0 : i32
    %2 = arith.cmpi ne, %1, %c0_i32_0 : i32
    scf.if %2 {
      %cst_10 = arith.constant 0.000000e+00 : f32
      %12 = vector.broadcast %cst_10 : f32 to vector<8x32xf32>
      %c0_11 = arith.constant 0 : index
      %c0_12 = arith.constant 0 : index
      %13 = vector.load %arg7[%c0_11, %c0_12] : memref<8x32xf32, #tpu.memory_space<vmem>>, vector<8x32xf32>
      tpu.vector_store %arg7[%c0_11, %c0_12], %12 {strides = array<i32>} : memref<8x32xf32, #tpu.memory_space<vmem>>, vector<8x32xf32>,
    } else {
    }
    %c0 = arith.constant 0 : index
    %c0_1 = arith.constant 0 : index
    %3 = vector.load %arg7[%c0, %c0_1] : memref<8x32xf32, #tpu.memory_space<vmem>>, vector<8x32xf32>
    %c0_2 = arith.constant 0 : index
    %c0_3 = arith.constant 0 : index
    %4 = vector.load %arg3[%c0_2, %c0_3] : memref<8x192xbf16, #tpu.memory_space<vmem>>, vector<8x192xbf16>
    %c0_4 = arith.constant 0 : index
    %c0_5 = arith.constant 0 : index
    %5 = vector.load %arg4[%c0_4, %c0_5] : memref<192x32xbf16, #tpu.memory_space<vmem>>, vector<192x32xbf16>
    %cst = arith.constant dense<0.000000e+00> : vector<8x32xf32>
    %6 = tpu.matmul %4, %5, %cst {dimension_numbers = #tpu.dot_dimension_numbers<[1], [0], [0], [1], [0, 0, 1, 1], [], []>} : vector<8x192xbf16>, vector<192x32xbf16>, vector<8x32xf32> -> vector<8x32xf32>
    %7 = arith.addf %3, %6 : vector<8x32xf32>
    %c0_6 = arith.constant 0 : index
    %c0_7 = arith.constant 0 : index
    %8 = vector.load %arg7[%c0_6, %c0_7] : memref<8x32xf32, #tpu.memory_space<vmem>>, vector<8x32xf32>
    tpu.vector_store %arg7[%c0_6, %c0_7], %7 {strides = array<i32>} : memref<8x32xf32, #tpu.memory_space<vmem>>, vector<8x32xf32>,
    %c0_i32_8 = arith.constant 0 : i32
    %9 = arith.cmpi eq, %arg2, %c0_i32_8 : i32
    %10 = arith.extui %9 : i1 to i32
    %c0_i32_9 = arith.constant 0 : i32
    %11 = arith.cmpi ne, %10, %c0_i32_9 : i32
    scf.if %11 {
      %c0_10 = arith.constant 0 : index
      %c0_11 = arith.constant 0 : index
      %12 = vector.load %arg7[%c0_10, %c0_11] : memref<8x32xf32, #tpu.memory_space<vmem>>, vector<8x32xf32>
      %c0_12 = arith.constant 0 : index
      %c0_13 = arith.constant 0 : index
      %13 = vector.load %arg5[%c0_12, %c0_13] : memref<1x32xf32, #tpu.memory_space<vmem>>, vector<1x32xf32>
      %14 = vector.broadcast %13 : vector<1x32xf32> to vector<8x32xf32>
      %15 = arith.addf %12, %14 : vector<8x32xf32>
      %c0_14 = arith.constant 0 : index
      %c0_15 = arith.constant 0 : index
      %16 = vector.load %arg6[%c0_14, %c0_15] : memref<8x32xf32, #tpu.memory_space<vmem>>, vector<8x32xf32>
      tpu.vector_store %arg6[%c0_14, %c0_15], %15 {strides = array<i32>} : memref<8x32xf32, #tpu.memory_space<vmem>>, vector<8x32xf32>,
    } else {
    }
    return
  }
  func.func @transform_0(%arg0: i32, %arg1: i32, %arg2: i32) -> (i32, i32) {
    %c0_i32 = arith.constant 0 : i32
    return %arg0, %arg2 : i32, i32
  }
  func.func @transform_1(%arg0: i32, %arg1: i32, %arg2: i32) -> (i32, i32) {
    %c0_i32 = arith.constant 0 : i32
    return %arg2, %arg1 : i32, i32
  }
  func.func @transform_2(%arg0: i32, %arg1: i32, %arg2: i32) -> (i32, i32) {
    %c0_i32 = arith.constant 0 : i32
    %c0_i32_0 = arith.constant 0 : i32
    return %c0_i32, %arg1 : i32, i32
  }
  func.func @transform_3(%arg0: i32, %arg1: i32, %arg2: i32) -> (i32, i32) {
    %c0_i32 = arith.constant 0 : i32
    return %arg0, %arg1 : i32, i32
  }
}

module attributes {stable_mosaic.version = 11 : i64} {
  func.func @_layernorm_kernel(%arg0: i32, %arg1: memref<10x32xf32, #tpu.memory_space<vmem>>, %arg2: memref<1x32xf32, #tpu.memory_space<vmem>>, %arg3: memref<1x32xf32, #tpu.memory_space<vmem>>, %arg4: memref<10x32xf32, #tpu.memory_space<vmem>>) attributes {dimension_semantics = [#tpu.dimension_semantics<parallel>], iteration_bounds = array<i64: 1>, scalar_prefetch = 0 : i64, scratch_operands = 0 : i64, tpu.core_type = #tpu.core_type<tc>, window_params = [{transform_indices = @transform_0, window_bounds = array<i64: 10, 32>}, {pipeline_mode = #tpu.pipeline_mode<synchronous>, transform_indices = @transform_1, window_bounds = array<i64: 1, 32>}, {pipeline_mode = #tpu.pipeline_mode<synchronous>, transform_indices = @transform_2, window_bounds = array<i64: 1, 32>}, {transform_indices = @transform_3, window_bounds = array<i64: 10, 32>}]} {
    %c0 = arith.constant 0 : index
    %c0_0 = arith.constant 0 : index
    %0 = vector.load %arg1[%c0, %c0_0] : memref<10x32xf32, #tpu.memory_space<vmem>>, vector<10x32xf32>
    %cst = arith.constant dense<0.000000e+00> : vector<10xf32>
    %1 = vector.multi_reduction <add>, %0, %cst [1] : vector<10x32xf32> to vector<10xf32>
    %2 = vector.shape_cast %1 : vector<10xf32> to vector<10x1xf32>
    %cst_1 = arith.constant 3.200000e+01 : f32
    %3 = vector.broadcast %cst_1 : f32 to vector<10x1xf32>
    %4 = arith.divf %2, %3 : vector<10x1xf32>
    %5 = vector.broadcast %4 : vector<10x1xf32> to vector<10x32xf32>
    %6 = arith.subf %0, %5 : vector<10x32xf32>
    %7 = arith.mulf %6, %6 : vector<10x32xf32>
    %cst_2 = arith.constant dense<0.000000e+00> : vector<10xf32>
    %8 = vector.multi_reduction <add>, %7, %cst_2 [1] : vector<10x32xf32> to vector<10xf32>
    %9 = vector.shape_cast %8 : vector<10xf32> to vector<10x1xf32>
    %cst_3 = arith.constant 3.200000e+01 : f32
    %10 = vector.broadcast %cst_3 : f32 to vector<10x1xf32>
    %11 = arith.divf %9, %10 : vector<10x1xf32>
    %12 = vector.broadcast %4 : vector<10x1xf32> to vector<10x32xf32>
    %13 = arith.subf %0, %12 : vector<10x32xf32>
    %cst_4 = arith.constant 9.99999974E-6 : f32
    %14 = vector.broadcast %cst_4 : f32 to vector<10x1xf32>
    %15 = arith.addf %11, %14 : vector<10x1xf32>
    %16 = math.rsqrt %15 : vector<10x1xf32>
    %17 = vector.broadcast %16 : vector<10x1xf32> to vector<10x32xf32>
    %18 = arith.mulf %13, %17 : vector<10x32xf32>
    %c0_5 = arith.constant 0 : index
    %c0_6 = arith.constant 0 : index
    %19 = vector.load %arg2[%c0_5, %c0_6] : memref<1x32xf32, #tpu.memory_space<vmem>>, vector<1x32xf32>
    %20 = vector.broadcast %19 : vector<1x32xf32> to vector<10x32xf32>
    %21 = arith.mulf %18, %20 : vector<10x32xf32>
    %c0_7 = arith.constant 0 : index
    %c0_8 = arith.constant 0 : index
    %22 = vector.load %arg3[%c0_7, %c0_8] : memref<1x32xf32, #tpu.memory_space<vmem>>, vector<1x32xf32>
    %23 = vector.broadcast %22 : vector<1x32xf32> to vector<10x32xf32>
    %24 = arith.addf %21, %23 : vector<10x32xf32>
    %c0_9 = arith.constant 0 : index
    %c0_10 = arith.constant 0 : index
    %25 = vector.load %arg4[%c0_9, %c0_10] : memref<10x32xf32, #tpu.memory_space<vmem>>, vector<10x32xf32>
    tpu.vector_store %arg4[%c0_9, %c0_10], %24 {strides = array<i32>} : memref<10x32xf32, #tpu.memory_space<vmem>>, vector<10x32xf32>,
    return
  }
  func.func @transform_0(%arg0: i32) -> (i32, i32) {
    %c0_i32 = arith.constant 0 : i32
    %c0_i32_0 = arith.constant 0 : i32
    return %arg0, %c0_i32 : i32, i32
  }
  func.func @transform_1(%arg0: i32) -> (i32, i32) {
    %c0_i32 = arith.constant 0 : i32
    %c0_i32_0 = arith.constant 0 : i32
    %c0_i32_1 = arith.constant 0 : i32
    return %c0_i32, %c0_i32_0 : i32, i32
  }
  func.func @transform_2(%arg0: i32) -> (i32, i32) {
    %c0_i32 = arith.constant 0 : i32
    %c0_i32_0 = arith.constant 0 : i32
    %c0_i32_1 = arith.constant 0 : i32
    return %c0_i32, %c0_i32_0 : i32, i32
  }
  func.func @transform_3(%arg0: i32) -> (i32, i32) {
    %c0_i32 = arith.constant 0 : i32
    %c0_i32_0 = arith.constant 0 : i32
    return %arg0, %c0_i32 : i32, i32
  }
}

module attributes {stable_mosaic.version = 11 : i64} {
  func.func @_ln_mm_bias_kernel(%arg0: i32, %arg1: memref<10x32xf32, #tpu.memory_space<vmem>>, %arg2: memref<1x32xf32, #tpu.memory_space<vmem>>, %arg3: memref<1x32xf32, #tpu.memory_space<vmem>>, %arg4: memref<32x96xbf16, #tpu.memory_space<vmem>>, %arg5: memref<1x96xf32, #tpu.memory_space<vmem>>, %arg6: memref<10x96xbf16, #tpu.memory_space<vmem>>) attributes {dimension_semantics = [#tpu.dimension_semantics<parallel>], iteration_bounds = array<i64: 1>, scalar_prefetch = 0 : i64, scratch_operands = 0 : i64, tpu.core_type = #tpu.core_type<tc>, window_params = [{transform_indices = @transform_0, window_bounds = array<i64: 10, 32>}, {pipeline_mode = #tpu.pipeline_mode<synchronous>, transform_indices = @transform_1, window_bounds = array<i64: 1, 32>}, {pipeline_mode = #tpu.pipeline_mode<synchronous>, transform_indices = @transform_2, window_bounds = array<i64: 1, 32>}, {pipeline_mode = #tpu.pipeline_mode<synchronous>, transform_indices = @transform_3, window_bounds = array<i64: 32, 96>}, {pipeline_mode = #tpu.pipeline_mode<synchronous>, transform_indices = @transform_4, window_bounds = array<i64: 1, 96>}, {transform_indices = @transform_5, window_bounds = array<i64: 10, 96>}]} {
    %c0 = arith.constant 0 : index
    %c0_0 = arith.constant 0 : index
    %0 = vector.load %arg1[%c0, %c0_0] : memref<10x32xf32, #tpu.memory_space<vmem>>, vector<10x32xf32>
    %cst = arith.constant dense<0.000000e+00> : vector<10xf32>
    %1 = vector.multi_reduction <add>, %0, %cst [1] : vector<10x32xf32> to vector<10xf32>
    %2 = vector.shape_cast %1 : vector<10xf32> to vector<10x1xf32>
    %cst_1 = arith.constant 3.200000e+01 : f32
    %3 = vector.broadcast %cst_1 : f32 to vector<10x1xf32>
    %4 = arith.divf %2, %3 : vector<10x1xf32>
    %5 = vector.broadcast %4 : vector<10x1xf32> to vector<10x32xf32>
    %6 = arith.subf %0, %5 : vector<10x32xf32>
    %7 = arith.mulf %6, %6 : vector<10x32xf32>
    %cst_2 = arith.constant dense<0.000000e+00> : vector<10xf32>
    %8 = vector.multi_reduction <add>, %7, %cst_2 [1] : vector<10x32xf32> to vector<10xf32>
    %9 = vector.shape_cast %8 : vector<10xf32> to vector<10x1xf32>
    %cst_3 = arith.constant 3.200000e+01 : f32
    %10 = vector.broadcast %cst_3 : f32 to vector<10x1xf32>
    %11 = arith.divf %9, %10 : vector<10x1xf32>
    %12 = vector.broadcast %4 : vector<10x1xf32> to vector<10x32xf32>
    %13 = arith.subf %0, %12 : vector<10x32xf32>
    %cst_4 = arith.constant 9.99999974E-6 : f32
    %14 = vector.broadcast %cst_4 : f32 to vector<10x1xf32>
    %15 = arith.addf %11, %14 : vector<10x1xf32>
    %16 = math.rsqrt %15 : vector<10x1xf32>
    %17 = vector.broadcast %16 : vector<10x1xf32> to vector<10x32xf32>
    %18 = arith.mulf %13, %17 : vector<10x32xf32>
    %c0_5 = arith.constant 0 : index
    %c0_6 = arith.constant 0 : index
    %19 = vector.load %arg2[%c0_5, %c0_6] : memref<1x32xf32, #tpu.memory_space<vmem>>, vector<1x32xf32>
    %20 = vector.broadcast %19 : vector<1x32xf32> to vector<10x32xf32>
    %21 = arith.mulf %18, %20 : vector<10x32xf32>
    %c0_7 = arith.constant 0 : index
    %c0_8 = arith.constant 0 : index
    %22 = vector.load %arg3[%c0_7, %c0_8] : memref<1x32xf32, #tpu.memory_space<vmem>>, vector<1x32xf32>
    %23 = vector.broadcast %22 : vector<1x32xf32> to vector<10x32xf32>
    %24 = arith.addf %21, %23 : vector<10x32xf32>
    %25 = arith.truncf %24 : vector<10x32xf32> to vector<10x32xbf16>
    %c0_9 = arith.constant 0 : index
    %c0_10 = arith.constant 0 : index
    %26 = vector.load %arg4[%c0_9, %c0_10] : memref<32x96xbf16, #tpu.memory_space<vmem>>, vector<32x96xbf16>
    %cst_11 = arith.constant dense<0.000000e+00> : vector<10x96xf32>
    %27 = tpu.matmul %25, %26, %cst_11 {dimension_numbers = #tpu.dot_dimension_numbers<[1], [0], [0], [1], [0, 0, 1, 1], [], []>} : vector<10x32xbf16>, vector<32x96xbf16>, vector<10x96xf32> -> vector<10x96xf32>
    %c0_12 = arith.constant 0 : index
    %c0_13 = arith.constant 0 : index
    %28 = vector.load %arg5[%c0_12, %c0_13] : memref<1x96xf32, #tpu.memory_space<vmem>>, vector<1x96xf32>
    %29 = vector.broadcast %28 : vector<1x96xf32> to vector<10x96xf32>
    %30 = arith.addf %27, %29 : vector<10x96xf32>
    %31 = arith.truncf %30 : vector<10x96xf32> to vector<10x96xbf16>
    %c0_14 = arith.constant 0 : index
    %c0_15 = arith.constant 0 : index
    %32 = vector.load %arg6[%c0_14, %c0_15] : memref<10x96xbf16, #tpu.memory_space<vmem>>, vector<10x96xbf16>
    tpu.vector_store %arg6[%c0_14, %c0_15], %31 {strides = array<i32>} : memref<10x96xbf16, #tpu.memory_space<vmem>>, vector<10x96xbf16>,
    return
  }
  func.func @transform_0(%arg0: i32) -> (i32, i32) {
    %c0_i32 = arith.constant 0 : i32
    %c0_i32_0 = arith.constant 0 : i32
    return %arg0, %c0_i32 : i32, i32
  }
  func.func @transform_1(%arg0: i32) -> (i32, i32) {
    %c0_i32 = arith.constant 0 : i32
    %c0_i32_0 = arith.constant 0 : i32
    %c0_i32_1 = arith.constant 0 : i32
    return %c0_i32, %c0_i32_0 : i32, i32
  }
  func.func @transform_2(%arg0: i32) -> (i32, i32) {
    %c0_i32 = arith.constant 0 : i32
    %c0_i32_0 = arith.constant 0 : i32
    %c0_i32_1 = arith.constant 0 : i32
    return %c0_i32, %c0_i32_0 : i32, i32
  }
  func.func @transform_3(%arg0: i32) -> (i32, i32) {
    %c0_i32 = arith.constant 0 : i32
    %c0_i32_0 = arith.constant 0 : i32
    %c0_i32_1 = arith.constant 0 : i32
    return %c0_i32, %c0_i32_0 : i32, i32
  }
  func.func @transform_4(%arg0: i32) -> (i32, i32) {
    %c0_i32 = arith.constant 0 : i32
    %c0_i32_0 = arith.constant 0 : i32
    %c0_i32_1 = arith.constant 0 : i32
    return %c0_i32, %c0_i32_0 : i32, i32
  }
  func.func @transform_5(%arg0: i32) -> (i32, i32) {
    %c0_i32 = arith.constant 0 : i32
    %c0_i32_0 = arith.constant 0 : i32
    return %arg0, %c0_i32 : i32, i32
  }
}

module attributes {stable_mosaic.version = 11 : i64} {
  func.func @_attn_out_residual_kernel(%arg0: i32, %arg1: memref<1x5x96xbf16, #tpu.memory_space<vmem>>, %arg2: memref<32x32xbf16, #tpu.memory_space<vmem>>, %arg3: memref<1x32xf32, #tpu.memory_space<vmem>>, %arg4: memref<1x5x32xf32, #tpu.memory_space<vmem>>, %arg5: memref<1x5x32xf32, #tpu.memory_space<vmem>>) attributes {dimension_semantics = [#tpu.dimension_semantics<parallel>], iteration_bounds = array<i64: 2>, scalar_prefetch = 0 : i64, scratch_operands = 0 : i64, tpu.core_type = #tpu.core_type<tc>, window_params = [{transform_indices = @transform_0, window_bounds = array<i64: 1, 5, 96>}, {pipeline_mode = #tpu.pipeline_mode<synchronous>, transform_indices = @transform_1, window_bounds = array<i64: 32, 32>}, {pipeline_mode = #tpu.pipeline_mode<synchronous>, transform_indices = @transform_2, window_bounds = array<i64: 1, 32>}, {transform_indices = @transform_3, window_bounds = array<i64: 1, 5, 32>}, {transform_indices = @transform_4, window_bounds = array<i64: 1, 5, 32>}]} {
    %c0 = arith.constant 0 : index
    %c0_0 = arith.constant 0 : index
    %c0_1 = arith.constant 0 : index
    %0 = vector.load %arg1[%c0, %c0_0, %c0_1] : memref<1x5x96xbf16, #tpu.memory_space<vmem>>, vector<1x5x96xbf16>
    %1 = vector.shape_cast %0 : vector<1x5x96xbf16> to vector<5x96xbf16>
    %2 = vector.extract_strided_slice %1 {offsets = [0, 0], sizes = [5, 16], strides = [1, 1]} : vector<5x96xbf16> to vector<5x16xbf16>
    %3 = arith.extf %2 : vector<5x16xbf16> to vector<5x16xf32>
    %cst = arith.constant 2.500000e-01 : f32
    %4 = vector.broadcast %cst : f32 to vector<5x16xf32>
    %5 = arith.mulf %3, %4 : vector<5x16xf32>
    %6 = vector.extract_strided_slice %1 {offsets = [0, 32], sizes = [5, 16], strides = [1, 1]} : vector<5x96xbf16> to vector<5x16xbf16>
    %7 = arith.extf %6 : vector<5x16xbf16> to vector<5x16xf32>
    %8 = vector.extract_strided_slice %1 {offsets = [0, 64], sizes = [5, 16], strides = [1, 1]} : vector<5x96xbf16> to vector<5x16xbf16>
    %9 = arith.extf %8 : vector<5x16xbf16> to vector<5x16xf32>
    %cst_2 = arith.constant dense<0.000000e+00> : vector<5x5xf32>
    %10 = tpu.matmul %5, %7, %cst_2 {dimension_numbers = #tpu.dot_dimension_numbers<[1], [1], [0], [0], [0, 0, 1, 0], [], []>} : vector<5x16xf32>, vector<5x16xf32>, vector<5x5xf32> -> vector<5x5xf32>
    %cst_3 = arith.constant dense<0xFF800000> : vector<5xf32>
    %11 = vector.multi_reduction <maximumf>, %10, %cst_3 [1] : vector<5x5xf32> to vector<5xf32>
    %12 = vector.shape_cast %11 : vector<5xf32> to vector<5x1xf32>
    %13 = vector.broadcast %12 : vector<5x1xf32> to vector<5x5xf32>
    %14 = arith.subf %10, %13 : vector<5x5xf32>
    %15 = math.exp %14 : vector<5x5xf32>
    %cst_4 = arith.constant dense<0.000000e+00> : vector<5xf32>
    %16 = vector.multi_reduction <add>, %15, %cst_4 [1] : vector<5x5xf32> to vector<5xf32>
    %17 = vector.shape_cast %16 : vector<5xf32> to vector<5x1xf32>
    %18 = tpu.reciprocal %17 {approx = true} : vector<5x1xf32> -> vector<5x1xf32>
    %19 = vector.broadcast %18 : vector<5x1xf32> to vector<5x5xf32>
    %20 = arith.mulf %15, %19 : vector<5x5xf32>
    %cst_5 = arith.constant dense<0.000000e+00> : vector<5x16xf32>
    %21 = tpu.matmul %20, %9, %cst_5 {dimension_numbers = #tpu.dot_dimension_numbers<[1], [0], [0], [1], [0, 0, 1, 1], [], []>} : vector<5x5xf32>, vector<5x16xf32>, vector<5x16xf32> -> vector<5x16xf32>
    %22 = vector.extract_strided_slice %1 {offsets = [0, 16], sizes = [5, 16], strides = [1, 1]} : vector<5x96xbf16> to vector<5x16xbf16>
    %23 = arith.extf %22 : vector<5x16xbf16> to vector<5x16xf32>
    %cst_6 = arith.constant 2.500000e-01 : f32
    %24 = vector.broadcast %cst_6 : f32 to vector<5x16xf32>
    %25 = arith.mulf %23, %24 : vector<5x16xf32>
    %26 = vector.extract_strided_slice %1 {offsets = [0, 48], sizes = [5, 16], strides = [1, 1]} : vector<5x96xbf16> to vector<5x16xbf16>
    %27 = arith.extf %26 : vector<5x16xbf16> to vector<5x16xf32>
    %28 = vector.extract_strided_slice %1 {offsets = [0, 80], sizes = [5, 16], strides = [1, 1]} : vector<5x96xbf16> to vector<5x16xbf16>
    %29 = arith.extf %28 : vector<5x16xbf16> to vector<5x16xf32>
    %cst_7 = arith.constant dense<0.000000e+00> : vector<5x5xf32>
    %30 = tpu.matmul %25, %27, %cst_7 {dimension_numbers = #tpu.dot_dimension_numbers<[1], [1], [0], [0], [0, 0, 1, 0], [], []>} : vector<5x16xf32>, vector<5x16xf32>, vector<5x5xf32> -> vector<5x5xf32>
    %cst_8 = arith.constant dense<0xFF800000> : vector<5xf32>
    %31 = vector.multi_reduction <maximumf>, %30, %cst_8 [1] : vector<5x5xf32> to vector<5xf32>
    %32 = vector.shape_cast %31 : vector<5xf32> to vector<5x1xf32>
    %33 = vector.broadcast %32 : vector<5x1xf32> to vector<5x5xf32>
    %34 = arith.subf %30, %33 : vector<5x5xf32>
    %35 = math.exp %34 : vector<5x5xf32>
    %cst_9 = arith.constant dense<0.000000e+00> : vector<5xf32>
    %36 = vector.multi_reduction <add>, %35, %cst_9 [1] : vector<5x5xf32> to vector<5xf32>
    %37 = vector.shape_cast %36 : vector<5xf32> to vector<5x1xf32>
    %38 = tpu.reciprocal %37 {approx = true} : vector<5x1xf32> -> vector<5x1xf32>
    %39 = vector.broadcast %38 : vector<5x1xf32> to vector<5x5xf32>
    %40 = arith.mulf %35, %39 : vector<5x5xf32>
    %cst_10 = arith.constant dense<0.000000e+00> : vector<5x16xf32>
    %41 = tpu.matmul %40, %29, %cst_10 {dimension_numbers = #tpu.dot_dimension_numbers<[1], [0], [0], [1], [0, 0, 1, 1], [], []>} : vector<5x5xf32>, vector<5x16xf32>, vector<5x16xf32> -> vector<5x16xf32>
    %42 = tpu.concatenate %21, %41 in 1 : vector<5x16xf32>, vector<5x16xf32> -> vector<5x32xf32>
    %43 = arith.truncf %42 : vector<5x32xf32> to vector<5x32xbf16>
    %c0_11 = arith.constant 0 : index
    %c0_12 = arith.constant 0 : index
    %44 = vector.load %arg2[%c0_11, %c0_12] : memref<32x32xbf16, #tpu.memory_space<vmem>>, vector<32x32xbf16>
    %cst_13 = arith.constant dense<0.000000e+00> : vector<5x32xf32>
    %45 = tpu.matmul %43, %44, %cst_13 {dimension_numbers = #tpu.dot_dimension_numbers<[1], [0], [0], [1], [0, 0, 1, 1], [], []>} : vector<5x32xbf16>, vector<32x32xbf16>, vector<5x32xf32> -> vector<5x32xf32>
    %c0_14 = arith.constant 0 : index
    %c0_15 = arith.constant 0 : index
    %46 = vector.load %arg3[%c0_14, %c0_15] : memref<1x32xf32, #tpu.memory_space<vmem>>, vector<1x32xf32>
    %47 = vector.broadcast %46 : vector<1x32xf32> to vector<5x32xf32>
    %48 = arith.addf %45, %47 : vector<5x32xf32>
    %c0_16 = arith.constant 0 : index
    %c0_17 = arith.constant 0 : index
    %c0_18 = arith.constant 0 : index
    %49 = vector.load %arg4[%c0_16, %c0_17, %c0_18] : memref<1x5x32xf32, #tpu.memory_space<vmem>>, vector<1x5x32xf32>
    %50 = vector.shape_cast %49 : vector<1x5x32xf32> to vector<5x32xf32>
    %51 = arith.addf %48, %50 : vector<5x32xf32>
    %c0_19 = arith.constant 0 : index
    %c0_20 = arith.constant 0 : index
    %c0_21 = arith.constant 0 : index
    %52 = vector.load %arg5[%c0_19, %c0_20, %c0_21] : memref<1x5x32xf32, #tpu.memory_space<vmem>>, vector<1x5x32xf32>
    %53 = vector.shape_cast %52 : vector<1x5x32xf32> to vector<5x32xf32>
    %54 = vector.shape_cast %51 : vector<5x32xf32> to vector<1x5x32xf32>
    tpu.vector_store %arg5[%c0_19, %c0_20, %c0_21], %54 {strides = array<i32>} : memref<1x5x32xf32, #tpu.memory_space<vmem>>, vector<1x5x32xf32>,
    return
  }
  func.func @transform_0(%arg0: i32) -> (i32, i32, i32) {
    %c0_i32 = arith.constant 0 : i32
    %c0_i32_0 = arith.constant 0 : i32
    %c0_i32_1 = arith.constant 0 : i32
    return %arg0, %c0_i32, %c0_i32_0 : i32, i32, i32
  }
  func.func @transform_1(%arg0: i32) -> (i32, i32) {
    %c0_i32 = arith.constant 0 : i32
    %c0_i32_0 = arith.constant 0 : i32
    %c0_i32_1 = arith.constant 0 : i32
    return %c0_i32, %c0_i32_0 : i32, i32
  }
  func.func @transform_2(%arg0: i32) -> (i32, i32) {
    %c0_i32 = arith.constant 0 : i32
    %c0_i32_0 = arith.constant 0 : i32
    %c0_i32_1 = arith.constant 0 : i32
    return %c0_i32, %c0_i32_0 : i32, i32
  }
  func.func @transform_3(%arg0: i32) -> (i32, i32, i32) {
    %c0_i32 = arith.constant 0 : i32
    %c0_i32_0 = arith.constant 0 : i32
    %c0_i32_1 = arith.constant 0 : i32
    return %arg0, %c0_i32, %c0_i32_0 : i32, i32, i32
  }
  func.func @transform_4(%arg0: i32) -> (i32, i32, i32) {
    %c0_i32 = arith.constant 0 : i32
    %c0_i32_0 = arith.constant 0 : i32
    %c0_i32_1 = arith.constant 0 : i32
    return %arg0, %c0_i32, %c0_i32_0 : i32, i32, i32
  }
}

module attributes {stable_mosaic.version = 11 : i64} {
  func.func @_ln_mlp_residual_kernel(%arg0: i32, %arg1: memref<10x32xf32, #tpu.memory_space<vmem>>, %arg2: memref<1x32xf32, #tpu.memory_space<vmem>>, %arg3: memref<1x32xf32, #tpu.memory_space<vmem>>, %arg4: memref<32x128xbf16, #tpu.memory_space<vmem>>, %arg5: memref<1x128xf32, #tpu.memory_space<vmem>>, %arg6: memref<128x32xbf16, #tpu.memory_space<vmem>>, %arg7: memref<1x32xf32, #tpu.memory_space<vmem>>, %arg8: memref<10x32xf32, #tpu.memory_space<vmem>>) attributes {dimension_semantics = [#tpu.dimension_semantics<parallel>], iteration_bounds = array<i64: 1>, scalar_prefetch = 0 : i64, scratch_operands = 0 : i64, tpu.core_type = #tpu.core_type<tc>, window_params = [{transform_indices = @transform_0, window_bounds = array<i64: 10, 32>}, {pipeline_mode = #tpu.pipeline_mode<synchronous>, transform_indices = @transform_1, window_bounds = array<i64: 1, 32>}, {pipeline_mode = #tpu.pipeline_mode<synchronous>, transform_indices = @transform_2, window_bounds = array<i64: 1, 32>}, {pipeline_mode = #tpu.pipeline_mode<synchronous>, transform_indices = @transform_3, window_bounds = array<i64: 32, 128>}, {pipeline_mode = #tpu.pipeline_mode<synchronous>, transform_indices = @transform_4, window_bounds = array<i64: 1, 128>}, {pipeline_mode = #tpu.pipeline_mode<synchronous>, transform_indices = @transform_5, window_bounds = array<i64: 128, 32>}, {pipeline_mode = #tpu.pipeline_mode<synchronous>, transform_indices = @transform_6, window_bounds = array<i64: 1, 32>}, {transform_indices = @transform_7, window_bounds = array<i64: 10, 32>}]} {
    %c0 = arith.constant 0 : index
    %c0_0 = arith.constant 0 : index
    %0 = vector.load %arg1[%c0, %c0_0] : memref<10x32xf32, #tpu.memory_space<vmem>>, vector<10x32xf32>
    %cst = arith.constant dense<0.000000e+00> : vector<10xf32>
    %1 = vector.multi_reduction <add>, %0, %cst [1] : vector<10x32xf32> to vector<10xf32>
    %2 = vector.shape_cast %1 : vector<10xf32> to vector<10x1xf32>
    %cst_1 = arith.constant 3.200000e+01 : f32
    %3 = vector.broadcast %cst_1 : f32 to vector<10x1xf32>
    %4 = arith.divf %2, %3 : vector<10x1xf32>
    %5 = vector.broadcast %4 : vector<10x1xf32> to vector<10x32xf32>
    %6 = arith.subf %0, %5 : vector<10x32xf32>
    %7 = arith.mulf %6, %6 : vector<10x32xf32>
    %cst_2 = arith.constant dense<0.000000e+00> : vector<10xf32>
    %8 = vector.multi_reduction <add>, %7, %cst_2 [1] : vector<10x32xf32> to vector<10xf32>
    %9 = vector.shape_cast %8 : vector<10xf32> to vector<10x1xf32>
    %cst_3 = arith.constant 3.200000e+01 : f32
    %10 = vector.broadcast %cst_3 : f32 to vector<10x1xf32>
    %11 = arith.divf %9, %10 : vector<10x1xf32>
    %12 = vector.broadcast %4 : vector<10x1xf32> to vector<10x32xf32>
    %13 = arith.subf %0, %12 : vector<10x32xf32>
    %cst_4 = arith.constant 9.99999974E-6 : f32
    %14 = vector.broadcast %cst_4 : f32 to vector<10x1xf32>
    %15 = arith.addf %11, %14 : vector<10x1xf32>
    %16 = math.rsqrt %15 : vector<10x1xf32>
    %17 = vector.broadcast %16 : vector<10x1xf32> to vector<10x32xf32>
    %18 = arith.mulf %13, %17 : vector<10x32xf32>
    %c0_5 = arith.constant 0 : index
    %c0_6 = arith.constant 0 : index
    %19 = vector.load %arg2[%c0_5, %c0_6] : memref<1x32xf32, #tpu.memory_space<vmem>>, vector<1x32xf32>
    %20 = vector.broadcast %19 : vector<1x32xf32> to vector<10x32xf32>
    %21 = arith.mulf %18, %20 : vector<10x32xf32>
    %c0_7 = arith.constant 0 : index
    %c0_8 = arith.constant 0 : index
    %22 = vector.load %arg3[%c0_7, %c0_8] : memref<1x32xf32, #tpu.memory_space<vmem>>, vector<1x32xf32>
    %23 = vector.broadcast %22 : vector<1x32xf32> to vector<10x32xf32>
    %24 = arith.addf %21, %23 : vector<10x32xf32>
    %25 = arith.truncf %24 : vector<10x32xf32> to vector<10x32xbf16>
    %c0_9 = arith.constant 0 : index
    %c0_10 = arith.constant 0 : index
    %26 = vector.load %arg4[%c0_9, %c0_10] : memref<32x128xbf16, #tpu.memory_space<vmem>>, vector<32x128xbf16>
    %cst_11 = arith.constant dense<0.000000e+00> : vector<10x128xf32>
    %27 = tpu.matmul %25, %26, %cst_11 {dimension_numbers = #tpu.dot_dimension_numbers<[1], [0], [0], [1], [0, 0, 1, 1], [], []>} : vector<10x32xbf16>, vector<32x128xbf16>, vector<10x128xf32> -> vector<10x128xf32>
    %c0_12 = arith.constant 0 : index
    %c0_13 = arith.constant 0 : index
    %28 = vector.load %arg5[%c0_12, %c0_13] : memref<1x128xf32, #tpu.memory_space<vmem>>, vector<1x128xf32>
    %29 = vector.broadcast %28 : vector<1x128xf32> to vector<10x128xf32>
    %30 = arith.addf %27, %29 : vector<10x128xf32>
    %cst_14 = arith.constant 1.702000e+00 : f32
    %31 = vector.broadcast %cst_14 : f32 to vector<10x128xf32>
    %32 = arith.mulf %31, %30 : vector<10x128xf32>
    %33 = arith.negf %32 : vector<10x128xf32>
    %34 = math.exp %33 : vector<10x128xf32>
    %cst_15 = arith.constant 1.000000e+00 : f32
    %35 = vector.broadcast %cst_15 : f32 to vector<10x128xf32>
    %36 = arith.addf %35, %34 : vector<10x128xf32>
    %37 = arith.divf %35, %36 : vector<10x128xf32>
    %38 = arith.mulf %30, %37 : vector<10x128xf32>
    %39 = arith.truncf %38 : vector<10x128xf32> to vector<10x128xbf16>
    %c0_16 = arith.constant 0 : index
    %c0_17 = arith.constant 0 : index
    %40 = vector.load %arg6[%c0_16, %c0_17] : memref<128x32xbf16, #tpu.memory_space<vmem>>, vector<128x32xbf16>
    %cst_18 = arith.constant dense<0.000000e+00> : vector<10x32xf32>
    %41 = tpu.matmul %39, %40, %cst_18 {dimension_numbers = #tpu.dot_dimension_numbers<[1], [0], [0], [1], [0, 0, 1, 1], [], []>} : vector<10x128xbf16>, vector<128x32xbf16>, vector<10x32xf32> -> vector<10x32xf32>
    %c0_19 = arith.constant 0 : index
    %c0_20 = arith.constant 0 : index
    %42 = vector.load %arg7[%c0_19, %c0_20] : memref<1x32xf32, #tpu.memory_space<vmem>>, vector<1x32xf32>
    %43 = vector.broadcast %42 : vector<1x32xf32> to vector<10x32xf32>
    %44 = arith.addf %41, %43 : vector<10x32xf32>
    %45 = arith.addf %0, %44 : vector<10x32xf32>
    %c0_21 = arith.constant 0 : index
    %c0_22 = arith.constant 0 : index
    %46 = vector.load %arg8[%c0_21, %c0_22] : memref<10x32xf32, #tpu.memory_space<vmem>>, vector<10x32xf32>
    tpu.vector_store %arg8[%c0_21, %c0_22], %45 {strides = array<i32>} : memref<10x32xf32, #tpu.memory_space<vmem>>, vector<10x32xf32>,
    return
  }
  func.func @transform_0(%arg0: i32) -> (i32, i32) {
    %c0_i32 = arith.constant 0 : i32
    %c0_i32_0 = arith.constant 0 : i32
    return %arg0, %c0_i32 : i32, i32
  }
  func.func @transform_1(%arg0: i32) -> (i32, i32) {
    %c0_i32 = arith.constant 0 : i32
    %c0_i32_0 = arith.constant 0 : i32
    %c0_i32_1 = arith.constant 0 : i32
    return %c0_i32, %c0_i32_0 : i32, i32
  }
  func.func @transform_2(%arg0: i32) -> (i32, i32) {
    %c0_i32 = arith.constant 0 : i32
    %c0_i32_0 = arith.constant 0 : i32
    %c0_i32_1 = arith.constant 0 : i32
    return %c0_i32, %c0_i32_0 : i32, i32
  }
  func.func @transform_3(%arg0: i32) -> (i32, i32) {
    %c0_i32 = arith.constant 0 : i32
    %c0_i32_0 = arith.constant 0 : i32
    %c0_i32_1 = arith.constant 0 : i32
    return %c0_i32, %c0_i32_0 : i32, i32
  }
  func.func @transform_4(%arg0: i32) -> (i32, i32) {
    %c0_i32 = arith.constant 0 : i32
    %c0_i32_0 = arith.constant 0 : i32
    %c0_i32_1 = arith.constant 0 : i32
    return %c0_i32, %c0_i32_0 : i32, i32
  }
  func.func @transform_5(%arg0: i32) -> (i32, i32) {
    %c0_i32 = arith.constant 0 : i32
    %c0_i32_0 = arith.constant 0 : i32
    %c0_i32_1 = arith.constant 0 : i32
    return %c0_i32, %c0_i32_0 : i32, i32
  }
  func.func @transform_6(%arg0: i32) -> (i32, i32) {
    %c0_i32 = arith.constant 0 : i32
    %c0_i32_0 = arith.constant 0 : i32
    %c0_i32_1 = arith.constant 0 : i32
    return %c0_i32, %c0_i32_0 : i32, i32
  }
  func.func @transform_7(%arg0: i32) -> (i32, i32) {
    %c0_i32 = arith.constant 0 : i32
    %c0_i32_0 = arith.constant 0 : i32
    return %arg0, %c0_i32 : i32, i32
  }
}

module attributes {stable_mosaic.version = 11 : i64} {
  func.func @_ln_mm_bias_kernel(%arg0: i32, %arg1: memref<2x32xf32, #tpu.memory_space<vmem>>, %arg2: memref<1x32xf32, #tpu.memory_space<vmem>>, %arg3: memref<1x32xf32, #tpu.memory_space<vmem>>, %arg4: memref<32x16xbf16, #tpu.memory_space<vmem>>, %arg5: memref<1x16xf32, #tpu.memory_space<vmem>>, %arg6: memref<2x16xf32, #tpu.memory_space<vmem>>) attributes {dimension_semantics = [#tpu.dimension_semantics<parallel>], iteration_bounds = array<i64: 1>, scalar_prefetch = 0 : i64, scratch_operands = 0 : i64, tpu.core_type = #tpu.core_type<tc>, window_params = [{transform_indices = @transform_0, window_bounds = array<i64: 2, 32>}, {pipeline_mode = #tpu.pipeline_mode<synchronous>, transform_indices = @transform_1, window_bounds = array<i64: 1, 32>}, {pipeline_mode = #tpu.pipeline_mode<synchronous>, transform_indices = @transform_2, window_bounds = array<i64: 1, 32>}, {pipeline_mode = #tpu.pipeline_mode<synchronous>, transform_indices = @transform_3, window_bounds = array<i64: 32, 16>}, {pipeline_mode = #tpu.pipeline_mode<synchronous>, transform_indices = @transform_4, window_bounds = array<i64: 1, 16>}, {transform_indices = @transform_5, window_bounds = array<i64: 2, 16>}]} {
    %c0 = arith.constant 0 : index
    %c0_0 = arith.constant 0 : index
    %0 = vector.load %arg1[%c0, %c0_0] : memref<2x32xf32, #tpu.memory_space<vmem>>, vector<2x32xf32>
    %cst = arith.constant dense<0.000000e+00> : vector<2xf32>
    %1 = vector.multi_reduction <add>, %0, %cst [1] : vector<2x32xf32> to vector<2xf32>
    %2 = vector.shape_cast %1 : vector<2xf32> to vector<2x1xf32>
    %cst_1 = arith.constant 3.200000e+01 : f32
    %3 = vector.broadcast %cst_1 : f32 to vector<2x1xf32>
    %4 = arith.divf %2, %3 : vector<2x1xf32>
    %5 = vector.broadcast %4 : vector<2x1xf32> to vector<2x32xf32>
    %6 = arith.subf %0, %5 : vector<2x32xf32>
    %7 = arith.mulf %6, %6 : vector<2x32xf32>
    %cst_2 = arith.constant dense<0.000000e+00> : vector<2xf32>
    %8 = vector.multi_reduction <add>, %7, %cst_2 [1] : vector<2x32xf32> to vector<2xf32>
    %9 = vector.shape_cast %8 : vector<2xf32> to vector<2x1xf32>
    %cst_3 = arith.constant 3.200000e+01 : f32
    %10 = vector.broadcast %cst_3 : f32 to vector<2x1xf32>
    %11 = arith.divf %9, %10 : vector<2x1xf32>
    %12 = vector.broadcast %4 : vector<2x1xf32> to vector<2x32xf32>
    %13 = arith.subf %0, %12 : vector<2x32xf32>
    %cst_4 = arith.constant 9.99999974E-6 : f32
    %14 = vector.broadcast %cst_4 : f32 to vector<2x1xf32>
    %15 = arith.addf %11, %14 : vector<2x1xf32>
    %16 = math.rsqrt %15 : vector<2x1xf32>
    %17 = vector.broadcast %16 : vector<2x1xf32> to vector<2x32xf32>
    %18 = arith.mulf %13, %17 : vector<2x32xf32>
    %c0_5 = arith.constant 0 : index
    %c0_6 = arith.constant 0 : index
    %19 = vector.load %arg2[%c0_5, %c0_6] : memref<1x32xf32, #tpu.memory_space<vmem>>, vector<1x32xf32>
    %20 = vector.broadcast %19 : vector<1x32xf32> to vector<2x32xf32>
    %21 = arith.mulf %18, %20 : vector<2x32xf32>
    %c0_7 = arith.constant 0 : index
    %c0_8 = arith.constant 0 : index
    %22 = vector.load %arg3[%c0_7, %c0_8] : memref<1x32xf32, #tpu.memory_space<vmem>>, vector<1x32xf32>
    %23 = vector.broadcast %22 : vector<1x32xf32> to vector<2x32xf32>
    %24 = arith.addf %21, %23 : vector<2x32xf32>
    %25 = arith.truncf %24 : vector<2x32xf32> to vector<2x32xbf16>
    %c0_9 = arith.constant 0 : index
    %c0_10 = arith.constant 0 : index
    %26 = vector.load %arg4[%c0_9, %c0_10] : memref<32x16xbf16, #tpu.memory_space<vmem>>, vector<32x16xbf16>
    %cst_11 = arith.constant dense<0.000000e+00> : vector<2x16xf32>
    %27 = tpu.matmul %25, %26, %cst_11 {dimension_numbers = #tpu.dot_dimension_numbers<[1], [0], [0], [1], [0, 0, 1, 1], [], []>} : vector<2x32xbf16>, vector<32x16xbf16>, vector<2x16xf32> -> vector<2x16xf32>
    %c0_12 = arith.constant 0 : index
    %c0_13 = arith.constant 0 : index
    %28 = vector.load %arg5[%c0_12, %c0_13] : memref<1x16xf32, #tpu.memory_space<vmem>>, vector<1x16xf32>
    %29 = vector.broadcast %28 : vector<1x16xf32> to vector<2x16xf32>
    %30 = arith.addf %27, %29 : vector<2x16xf32>
    %c0_14 = arith.constant 0 : index
    %c0_15 = arith.constant 0 : index
    %31 = vector.load %arg6[%c0_14, %c0_15] : memref<2x16xf32, #tpu.memory_space<vmem>>, vector<2x16xf32>
    tpu.vector_store %arg6[%c0_14, %c0_15], %30 {strides = array<i32>} : memref<2x16xf32, #tpu.memory_space<vmem>>, vector<2x16xf32>,
    return
  }
  func.func @transform_0(%arg0: i32) -> (i32, i32) {
    %c0_i32 = arith.constant 0 : i32
    %c0_i32_0 = arith.constant 0 : i32
    return %arg0, %c0_i32 : i32, i32
  }
  func.func @transform_1(%arg0: i32) -> (i32, i32) {
    %c0_i32 = arith.constant 0 : i32
    %c0_i32_0 = arith.constant 0 : i32
    %c0_i32_1 = arith.constant 0 : i32
    return %c0_i32, %c0_i32_0 : i32, i32
  }
  func.func @transform_2(%arg0: i32) -> (i32, i32) {
    %c0_i32 = arith.constant 0 : i32
    %c0_i32_0 = arith.constant 0 : i32
    %c0_i32_1 = arith.constant 0 : i32
    return %c0_i32, %c0_i32_0 : i32, i32
  }
  func.func @transform_3(%arg0: i32) -> (i32, i32) {
    %c0_i32 = arith.constant 0 : i32
    %c0_i32_0 = arith.constant 0 : i32
    %c0_i32_1 = arith.constant 0 : i32
    return %c0_i32, %c0_i32_0 : i32, i32
  }
  func.func @transform_4(%arg0: i32) -> (i32, i32) {
    %c0_i32 = arith.constant 0 : i32
    %c0_i32_0 = arith.constant 0 : i32
    %c0_i32_1 = arith.constant 0 : i32
    return %c0_i32, %c0_i32_0 : i32, i32
  }
  func.func @transform_5(%arg0: i32) -> (i32, i32) {
    %c0_i32 = arith.constant 0 : i32
    %c0_i32_0 = arith.constant 0 : i32
    return %arg0, %c0_i32 : i32, i32
  }
}

</mosaic_0001>

<bundles_post_ra>
// kernel: encode_image.11
= control target key start
LH: loop header
LB: loop body
LE: loop exit
PB: predicated region body
PF: predicated region fallthrough
CT: control target
= control target key end

     0   :  { %vm23_vm0 = vcmask 261120   ;;  %vm27_vm1 = vcmask 254976   ;;  %v183_v15 = vmov 0.0   ;;  %vm184_vm2 = vmmov 0   ;;  %s245_s0 = inlined_call_operand.vmem [shape: f32[10,32], index: 0, kind: input, shape index: {}]   ;;  %s246_s3 = inlined_call_operand.vmem [shape: bf16[32,96], index: 3, kind: input, shape index: {}]   ;;  %s247_s1 = inlined_call_operand.vmem [shape: f32[1,32], index: 1, kind: input, shape index: {}]   ;;  %s248_s2 = inlined_call_operand.vmem [shape: f32[1,32], index: 2, kind: input, shape index: {}]   ;;  %s249_s4 = inlined_call_operand.vmem [shape: f32[1,96], index: 4, kind: input, shape index: {}]   ;;  %s250_s5 = inlined_call_operand.vmem [shape: bf16[10,96], index: 5, kind: output, shape index: {}]  }
   0x1   :  { %v21_v0 = vld [vmem:[%s245_s0] sm:$0xff]  ;;  %v22_v1 = vld [vmem:[%s245_s0 + $0x8] sm:$0x3]  ;;  %167 = vmatprep.subr.bf16.mxu0 %v183_v15  ;;  %171 = vmatprep.mubr.msk.bf16.mxu0 %vm184_vm2, %v183_v15  ;;  %vm146_vm3 = vcmask 781312   ;;  %vm148_vm4 = vcmask 778240  }
   0x2   :  { %v24_v2 = vsel %vm23_vm0, %v21_v0, 0.0  ;;  %v28_v3 = vsel %vm27_vm1, %v22_v1, 0.0  ;;  %v177_v14 = vld [vmem:[%s246_s3] sm:$0xff]   ;;  %v178_v16 = vld [vmem:[%s246_s3 + $0x8] sm:$0xff]  }
   0x3   :  { %25 = vadd.xlane.f32.xlu0 %v24_v2  ;;  %168 = vmatpush3.bf16.msra.mxu0 %v177_v14  ;;  %v154_v25 = vld [vmem:[%s247_s1] ss:$0 sm:$0xff] }
   0x4   :  { %169 = vmatprep.subr.bf16.mxu0 %v183_v15  ;;  %v155_v29 = vld [vmem:[%s248_s2] ss:$0 sm:$0xff] }
   0x5   :  { %v156_v34 = vld [vmem:[%s249_s4] ss:$0 sm:$0xff] }
   0x7   :  { %29 = vadd.xlane.f32.xlu0 %v28_v3  ;;  %170 = vmatpush3.bf16.msra.mxu0 %v178_v16 }
  0x90   :  { %v26_v4 = vpop.xlane.xlu0 %25 }
  0x91   :  { %v32_v5 = vmul.f32 0.03125, %v26_v4 }
  0x93   :  { %v34_v6 = vsub.f32 %v21_v0, %v32_v5 }
  0x94   :  { %v30_v7 = vpop.xlane.xlu0 %29 }
  0x95   :  { %v33_v8 = vmul.f32 0.03125, %v30_v7  ;;  %v36_v9 = vmul.f32 %v34_v6, %v34_v6 }
  0x97   :  { %v35_v10 = vsub.f32 %v22_v1, %v33_v8  ;;  %v38_v11 = vsel %vm23_vm0, %v36_v9, 0.0 }
  0x98   :  { %39 = vadd.xlane.f32.xlu1 %v38_v11 }
  0x99   :  { %v37_v12 = vmul.f32 %v35_v10, %v35_v10 }
  0x9b   :  { %v41_v13 = vsel %vm27_vm1, %v37_v12, 0.0 }
  0x9c   :  { %42 = vadd.xlane.f32.xlu1 %v41_v13 }
 0x125   :  { %v40_v17 = vpop.xlane.xlu1 %39 }
 0x126   :  { %v44_v18 = vmul.f32 0.03125, %v40_v17 }
 0x128   :  { %v46_v19 = vadd.f32 1e-05, %v44_v18 }
 0x129   :  { %v43_v20 = vpop.xlane.xlu1 %42 }
 0x12a   :  { %179 = vrsqrt.f32 %v46_v19  ;;  %v45_v21 = vmul.f32 0.03125, %v43_v20 }
 0x12c   :  { %v47_v22 = vadd.f32 1e-05, %v45_v21 }
 0x12e   :  { %181 = vrsqrt.f32 %v47_v22 }
 0x134   :  { %v180_v23 = vpop.eup %179 }
 0x135   :  { %v50_v24 = vmul.f32 %v180_v23, %v34_v6 }
 0x137   :  { %v59_v28 = vmul.f32 %v154_v25, %v50_v24 }
 0x138   :  { %v182_v26 = vpop.eup %181 }
 0x139   :  { %v51_v27 = vmul.f32 %v182_v26, %v35_v10  ;;  %v68_v31 = vadd.f32 %v155_v29, %v59_v28 }
 0x13b   :  { %v60_v30 = vmul.f32 %v154_v25, %v51_v27 }
 0x13d   :  { %v69_v32 = vadd.f32 %v155_v29, %v60_v30 }
 0x13f   :  { %v70_v33 = vpack.c.bf16 %v69_v32, %v68_v31 }
 0x141   :  { %172 = vmatmul.mubr.msk.bf16.vlgmr.msra.gmra.mrb[0].mxu0 %vm23_vm0, %v70_v33 }
 0x214   :  { %v131_v35 = vpop.f32.mrb[0].mxu0 }
 0x215   :  { %v132_v36 = vadd.f32 %v156_v34, %v131_v35  ;;  %v173_v37 = vpop.f32.mrb[1].mxu0 }
 0x216   :  { %v134_v38 = vpop.f32.mrb[2].mxu0 }
 0x217   :  { %v162_v39 = vpack.c.bf16 %v132_v36, %v132_v36  ;;  %v135_v40 = vadd.f32 %v156_v34, %v134_v38  ;;  %v174_v41 = vpop.f32.mrb[3].mxu0 }
 0x219   :  { %147 = vst.msk [vmem:[%s250_s5] sm:$0xf] %vm146_vm3, %v162_v39  ;;  %v163_v42 = vpack.c.bf16 %v135_v40, %v135_v40 }
 0x21b   :  { %149 = vst.msk [vmem:[%s250_s5 + $0x4] sm:$0x1] %vm148_vm4, %v163_v42 }

// kernel: encode_image.9
= control target key start
LH: loop header
LB: loop body
LE: loop exit
PB: predicated region body
PF: predicated region fallthrough
CT: control target
= control target key end

     0   :  { %vm19_vm0 = vcmask 261120   ;;  %v221_v0 = vmov 0   ;;  %v222_v2 = vmov 0.0   ;;  %vm125_vm1 = vcmask 523264   ;;  %s291_s1 = inlined_call_operand.vmem [shape: bf16[192,32], index: 1, kind: input, shape index: {}]   ;;  %s292_s0 = inlined_call_operand.vmem [shape: bf16[8,192], index: 0, kind: input, shape index: {}]   ;;  %s293_s2 = inlined_call_operand.vmem [shape: f32[1,32], index: 2, kind: input, shape index: {}]   ;;  %s294_s3 = inlined_call_operand.vmem [shape: f32[8,32], index: 3, kind: output, shape index: {}]  }
   0x1   :  { %129 = vmatprep.subr.bf16.mxu0 %v221_v0  ;;  %v207_v1 = vld [vmem:[%s291_s1] sm:$0xff]   ;;  %20 = vst.msk [vmem:[#allocation2] sm:$0xff] %vm19_vm0, %v222_v2  ;;  %v208_v3 = vld [vmem:[%s291_s1 + $0x8] sm:$0xff]   ;;  %v209_v4 = vld [vmem:[%s291_s1 + $0x10] sm:$0xff]  }
   0x2   :  { %130 = vmatpush1.bf16.msra.mxu0 %v207_v1  ;;  %v210_v5 = vld [vmem:[%s291_s1 + $0x18] sm:$0xff]   ;;  %v22_v6 = vld [vmem:[%s292_s0] sm:$0xff]  ;;  %v212_v9 = vld [vmem:[%s291_s1 + $0x28] sm:$0xff]  }
   0x3   :  { %131 = vmatprep.subr.bf16.mxu0 %v221_v0  ;;  %v190_v7 = vcombine.high %v22_v6, %v22_v6  ;;  %v211_v8 = vld [vmem:[%s291_s1 + $0x20] sm:$0xff]   ;;  %v213_v10 = vld [vmem:[%s291_s1 + $0x30] sm:$0xff]   ;;  %v214_v11 = vld [vmem:[%s291_s1 + $0x38] sm:$0xff]   ;;  %v189_v16 = vcombine.low %v22_v6, %v22_v6 }
   0x4   :  { %v215_v12 = vld [vmem:[%s291_s1 + $0x40] sm:$0xff]   ;;  %v216_v13 = vld [vmem:[%s291_s1 + $0x48] sm:$0xff]   ;;  %v217_v14 = vld [vmem:[%s291_s1 + $0x50] sm:$0xff]  }
   0x5   :  { %203 = vmatprep.mubr.msk.bf16.mxu0 %vm125_vm1, %v190_v7  ;;  %v218_v15 = vld [vmem:[%s291_s1 + $0x58] sm:$0xff]   ;;  %v204_v23 = vld [vmem:[%s293_s2] ss:$0 sm:$0xff] }
   0x6   :  { %132 = vmatpush1.bf16.msra.mxu0 %v208_v3 }
   0x7   :  { %133 = vmatprep.subr.bf16.mxu0 %v221_v0 }
   0x8   :  { %v21_v17 = vld [vmem:[#allocation2] sm:$0xff] }
   0xa   :  { %134 = vmatpush1.bf16.msra.mxu0 %v209_v4 }
   0xb   :  { %135 = vmatprep.subr.bf16.mxu0 %v221_v0 }
   0xe   :  { %136 = vmatpush1.bf16.msra.mxu0 %v210_v5 }
   0xf   :  { %137 = vmatprep.subr.bf16.mxu0 %v221_v0 }
  0x12   :  { %138 = vmatpush1.bf16.msra.mxu0 %v211_v8 }
  0x13   :  { %139 = vmatprep.subr.bf16.mxu0 %v221_v0 }
  0x16   :  { %140 = vmatpush1.bf16.msra.mxu0 %v212_v9 }
  0x17   :  { %141 = vmatprep.subr.bf16.mxu0 %v221_v0 }
  0x1a   :  { %142 = vmatpush1.bf16.msra.mxu0 %v213_v10 }
  0x1b   :  { %143 = vmatprep.subr.bf16.mxu0 %v221_v0 }
  0x1e   :  { %144 = vmatpush1.bf16.msra.mxu0 %v214_v11 }
  0x1f   :  { %145 = vmatprep.subr.bf16.mxu0 %v221_v0 }
  0x22   :  { %146 = vmatpush1.bf16.msra.mxu0 %v215_v12 }
  0x23   :  { %147 = vmatprep.subr.bf16.mxu0 %v221_v0 }
  0x26   :  { %148 = vmatpush1.bf16.msra.mxu0 %v216_v13 }
  0x27   :  { %149 = vmatprep.subr.bf16.mxu0 %v221_v0 }
  0x2a   :  { %150 = vmatpush1.bf16.msra.mxu0 %v217_v14 }
  0x2b   :  { %151 = vmatprep.subr.bf16.mxu0 %v221_v0 }
  0x2e   :  { %152 = vmatpush1.bf16.msra.mxu0 %v218_v15 }
  0x31   :  { %162 = vmatmul.mubr.bf16.vlgmr.msra.gmra.mrb[0].mxu0 %v189_v16 }
 0x104   :  { %v163_v18 = vpop.f32.mrb[0].mxu0 }
 0x105   :  { %v169_v19 = vadd.f32 %v163_v18, %v21_v17  ;;  %v165_v20 = vpop.f32.mrb[1].mxu0 }
 0x106   :  { %v166_v21 = vpop.f32.mrb[2].mxu0 }
 0x107   :  { %171 = vst.msk [vmem:[#allocation2] sm:$0xff] %vm19_vm0, %v169_v19  ;;  %v167_v22 = vpop.f32.mrb[3].mxu0 }
 0x10e   :  { %v175_v24 = vld [vmem:[#allocation2] sm:$0xff] }
 0x10f   :  { %v183_v25 = vadd.f32 %v204_v23, %v175_v24 }
 0x111   :  { %184 = vst.msk [vmem:[%s294_s3] sm:$0xff] %vm19_vm0, %v183_v25 }

// kernel: encode_image.10
= control target key start
LH: loop header
LB: loop body
LE: loop exit
PB: predicated region body
PF: predicated region fallthrough
CT: control target
= control target key end

     0   :  { %vm16_vm0 = vcmask 261120   ;;  %vm20_vm1 = vcmask 254976   ;;  %s119_s0 = inlined_call_operand.vmem [shape: f32[10,32], index: 0, kind: input, shape index: {}]   ;;  %s120_s1 = inlined_call_operand.vmem [shape: f32[1,32], index: 1, kind: input, shape index: {}]   ;;  %s121_s2 = inlined_call_operand.vmem [shape: f32[1,32], index: 2, kind: input, shape index: {}]   ;;  %s122_s3 = inlined_call_operand.vmem [shape: f32[10,32], index: 3, kind: output, shape index: {}]  }
   0x1   :  { %v14_v0 = vld [vmem:[%s119_s0] sm:$0xff]  ;;  %v15_v1 = vld [vmem:[%s119_s0 + $0x8] sm:$0x3] }
   0x2   :  { %v17_v2 = vsel %vm16_vm0, %v14_v0, 0.0  ;;  %v21_v3 = vsel %vm20_vm1, %v15_v1, 0.0  ;;  %v69_v21 = vld [vmem:[%s120_s1] ss:$0 sm:$0xff] }
   0x3   :  { %18 = vadd.xlane.f32.xlu0 %v17_v2  ;;  %v70_v23 = vld [vmem:[%s121_s2] ss:$0 sm:$0xff] }
   0x7   :  { %22 = vadd.xlane.f32.xlu0 %v21_v3 }
  0x90   :  { %v19_v4 = vpop.xlane.xlu0 %18 }
  0x91   :  { %v25_v5 = vmul.f32 0.03125, %v19_v4 }
  0x93   :  { %v27_v6 = vsub.f32 %v14_v0, %v25_v5 }
  0x94   :  { %v23_v7 = vpop.xlane.xlu0 %22 }
  0x95   :  { %v26_v8 = vmul.f32 0.03125, %v23_v7  ;;  %v29_v9 = vmul.f32 %v27_v6, %v27_v6 }
  0x97   :  { %v28_v10 = vsub.f32 %v15_v1, %v26_v8  ;;  %v31_v11 = vsel %vm16_vm0, %v29_v9, 0.0 }
  0x98   :  { %32 = vadd.xlane.f32.xlu1 %v31_v11 }
  0x99   :  { %v30_v12 = vmul.f32 %v28_v10, %v28_v10 }
  0x9b   :  { %v34_v13 = vsel %vm20_vm1, %v30_v12, 0.0 }
  0x9c   :  { %35 = vadd.xlane.f32.xlu1 %v34_v13 }
 0x125   :  { %v33_v14 = vpop.xlane.xlu1 %32 }
 0x126   :  { %v37_v15 = vmul.f32 0.03125, %v33_v14 }
 0x128   :  { %v39_v16 = vadd.f32 1e-05, %v37_v15 }
 0x129   :  { %v36_v17 = vpop.xlane.xlu1 %35 }
 0x12a   :  { %71 = vrsqrt.f32 %v39_v16  ;;  %v38_v18 = vmul.f32 0.03125, %v36_v17 }
 0x12c   :  { %v40_v19 = vadd.f32 1e-05, %v38_v18 }
 0x12e   :  { %73 = vrsqrt.f32 %v40_v19 }
 0x134   :  { %v72_v20 = vpop.eup %71 }
 0x135   :  { %v43_v22 = vmul.f32 %v72_v20, %v27_v6 }
 0x137   :  { %v52_v24 = vmul.f32 %v69_v21, %v43_v22 }
 0x138   :  { %v74_v25 = vpop.eup %73 }
 0x139   :  { %v61_v26 = vadd.f32 %v70_v23, %v52_v24  ;;  %v44_v27 = vmul.f32 %v74_v25, %v28_v10 }
 0x13b   :  { %63 = vst.msk [vmem:[%s122_s3] sm:$0xff] %vm16_vm0, %v61_v26  ;;  %v53_v28 = vmul.f32 %v69_v21, %v44_v27 }
 0x13d   :  { %v62_v29 = vadd.f32 %v70_v23, %v53_v28 }
 0x13f   :  { %64 = vst.msk [vmem:[%s122_s3 + $0x8] sm:$0x3] %vm20_vm1, %v62_v29 }

// kernel: encode_image.12
= control target key start
LH: loop header
LB: loop body
LE: loop exit
PB: predicated region body
PF: predicated region fallthrough
CT: control target
= control target key end

     0   :  { %s820_s15 = smov 0   ;;  %s878_s0 = inlined_call_operand.vmem [shape: bf16[2,5,96], index: 0, kind: input, shape index: {}]   ;;  %s879_s1 = inlined_call_operand.vmem [shape: bf16[32,32], index: 1, kind: input, shape index: {}]   ;;  %s880_s2 = inlined_call_operand.vmem [shape: f32[1,32], index: 2, kind: input, shape index: {}]   ;;  %s881_s3 = inlined_call_operand.vmem [shape: f32[2,5,32], index: 3, kind: input, shape index: {}]   ;;  %s882_s4 = inlined_call_operand.vmem [shape: f32[2,5,32], index: 4, kind: output, shape index: {}]  }
   0x1 LB: > { %s692_s16 = sadd.s32 4294967295, %s785_s15   ;;  %p696_p0 = scmp.ge.s32.totalorder %s785_s15, 1  ;;  %s785_s15 = sphi %s820_s15, %s14_s15  }
   0x2   : > { %p170_p1 = scmp.lt.s32.totalorder %s785_s15, 3 }
   0x4   : > { %p171_p2 = pnand %p696_p0, %p170_p1 }
   0x5   : > { %p198_p3 = scmp.lt.s32.totalorder (!%p171_p2), %s692_s16, 1  ;;  %v787_v0 = vmov (!%p171_p2), 0.0   ;;  %vm788_vm0 = vmmov (!%p171_p2), 0   ;;  %s789_s21 = smov (!%p171_p2), 96   ;;  %vm217_vm1 = vcmask (!%p171_p2), 130048   ;;  %vm293_vm2 = vcmask (!%p171_p2), 36864  }
   0x6   : > { %174 = sbr.rel (%p171_p2) target bundleno = 1214 (0x4be), region = 36  ;;  %725 = vmatprep.subr.mxu0 (!%p171_p2), %v787_v0  ;;  %727 = vmatprep.mubr.msk.f32.mxu0 (!%p171_p2), %vm788_vm0, %v787_v0  ;;  %s790_s22 = smov (!%p171_p2), 112   ;;  %vm311_vm3 = vcmask (!%p171_p2), 1044480   ;;  %vm307_vm4 = vcmask (!%p171_p2), 39936   ;;  %v769_v31 = vld [vmem:[%s879_s1] sm:$0xff] (!%p171_p2)   ;;  %v770_v32 = vld [vmem:[%s879_s1 + $0x8] sm:$0xff] (!%p171_p2)  }
   0x7   : > { %730 = vmatprep.subr.mxu1 (!%p171_p2), %v787_v0  ;;  %732 = vmatprep.mubr.msk.f32.mxu1 (!%p171_p2), %vm788_vm0, %v787_v0  ;;  %s791_s23 = smov (!%p171_p2), 80   ;;  %s792_s24 = smov (!%p171_p2), 48   ;;  %vm579_vm5 = vcmask (!%p171_p2), 261120   ;;  %v708_v40 = vld [vmem:[%s880_s2] ss:$0 sm:$0xff] (!%p171_p2)  ;;  %vm625_vm6 = vcmask (!%p171_p2), 258048  }
   0x8   : > { %s793_s25 = smov (!%p171_p2), 64   ;;  %s794_s30 = smov (!%p171_p2), 16  }
   0xd   : > { %s884_s16 = smov (!%p198_p3, %s692_s16), 1 }
   0xe   : > { %s697_s17 = sshll.u32 %s884_s16, 2  ;;  %s698_s5 = sshll.u32 %s884_s16, 3 }
   0xf   : > { %s201_s20 = scalar_lea.vmem %s878_s0, %s697_s17  ;;  %s205_s8 = scalar_lea.vmem %s881_s3, %s698_s5 }
  0x10   : > { %v211_v1 = vld [vmem:[%s201_s20] sm:$0x7]  ;;  %s209_s13 = scalar_lea.vmem %s882_s4, %s698_s5 }
  0x11   : > { %v212_v2 = vunpack.c.l.bf16 %v211_v1  ;;  %v623_v42 = vld [vmem:[%s205_s8] sm:$0x1f] }
  0x13   : > { %215 = vrot.lane.b32.xlu0 %v212_v2, %s789_s21  ;;  %v213_v3 = vmul.f32 0.25, %v212_v2 }
  0x15   : > { %384 = vrot.lane.b32.xlu1 %v213_v3, %s790_s22 }
  0x17   : > { %386 = vrot.lane.b32.xlu0 %v212_v2, %s791_s23 }
  0x85   : > { %v216_v4 = vpop.permute.xlu0 %215 }
  0x86   : > { %726 = vmatpush3.xpose.msk.msra.mxu0 %vm217_vm1, %v216_v4 }
  0x87   : > { %735 = vmatprep.subr.mxu0 %v787_v0  ;;  %v385_v6 = vpop.permute.xlu1 %384 }
  0x89   : > { %v387_v5 = vpop.permute.xlu0 %386  ;;  %728 = vmatmul.mubr.msk.f32.vlgmr.msra.gmra.mrb[0].mxu0 %vm217_vm1, %v213_v3 }
  0x8a   : > { %736 = vmatpush3.xpose.msk.msra.mxu0 %vm217_vm1, %v387_v5  ;;  %737 = vmatprep.mubr.msk.f32.mxu0 %vm788_vm0, %v787_v0 }
  0x8b   : > { %740 = vmatprep.subr.mxu0 %v787_v0 }
  0x8d   : > { %738 = vmatmul.mubr.msk.f32.vlgmr.msra.gmra.mrb[2].mxu0 %vm217_vm1, %v385_v6 }
  0x8e   : > { %742 = vmatprep.mubr.msk.f32.mxu0 %vm788_vm0, %v787_v0 }
 0x15c   : > { %v289_v7 = vpop.f32.mrb[0].mxu0 }
 0x15d   : > { %v729_v8 = vpop.f32.mrb[1].mxu0  ;;  %v294_v9 = vsel %vm293_vm2, %v289_v7, -inf }
 0x15e   : > { %295 = vmax.xlane.f32.xlu0 %v294_v9 }
 0x160   : > { %v458_v10 = vpop.f32.mrb[2].mxu0 }
 0x161   : > { %v739_v11 = vpop.f32.mrb[3].mxu0  ;;  %v462_v12 = vsel %vm293_vm2, %v458_v10, -inf }
 0x162   : > { %463 = vmax.xlane.f32.xlu1 %v462_v12 }
 0x173   : > { %473 = vrot.lane.b32.xlu1 %v212_v2, %s792_s24 }
 0x1eb   : > { %v296_v13 = vpop.xlane.xlu0 %295 }
 0x1ec   : > { %v297_v14 = vsub.f32 %v289_v7, %v296_v13 }
 0x1ee   : > { %v298_v17 = vmul.f32 1.442695, %v297_v14 }
 0x1ef   : > { %v464_v15 = vpop.xlane.xlu1 %463 }
 0x1f0   : > { %v465_v16 = vsub.f32 %v458_v10, %v464_v15 }
 0x1f2   : > { %v466_v18 = vmul.f32 1.442695, %v465_v16 }
 0x1f3   : > { %v474_v23 = vpop.permute.xlu1 %473 }
 0x1f4   : > { %771 = vpow2.f32 %v466_v18  ;;  %741 = vmatpush3.msk.msra.mxu0 %vm311_vm3, %v474_v23 }
 0x1f5   : > { %773 = vpow2.f32 %v298_v17 }
 0x1fe   : > { %v772_v19 = vpop.eup %771 }
 0x1ff   : > { %v468_v20 = vsel %vm293_vm2, %v772_v19, 0.0  ;;  %v774_v21 = vpop.eup %773 }
 0x200   : > { %469 = vadd.xlane.f32.xlu0 %v468_v20  ;;  %v300_v22 = vsel %vm293_vm2, %v774_v21, 0.0 }
 0x204   : > { %301 = vadd.xlane.f32.xlu0 %v300_v22 }
 0x21a   : > { %305 = vrot.lane.b32.xlu0 %v212_v2, %s793_s25 }
 0x28d   : > { %v470_v24 = vpop.xlane.xlu0 %469 }
 0x28e   : > { %775 = vrcp.f32 %v470_v24 }
 0x291   : > { %v302_v25 = vpop.xlane.xlu0 %301 }
 0x292   : > { %777 = vrcp.f32 %v302_v25 }
 0x295   : > { %v306_v26 = vpop.permute.xlu0 %305 }
 0x296   : > { %731 = vmatpush3.msk.msra.mxu1 %vm311_vm3, %v306_v26 }
 0x297   : > { %745 = vmatprep.subr.bf16.mxu1 %v787_v0 }
 0x298   : > { %v776_v27 = vpop.eup %775 }
 0x299   : > { %v472_v28 = vmul.f32 %v776_v27, %v772_v19 }
 0x29b   : > { %743 = vmatmul.mubr.msk.f32.vlgmr.msra.gmra.mrb[4].mxu0 %vm307_vm4, %v472_v28 }
 0x29c   : > { %v778_v29 = vpop.eup %777 }
 0x29d   : > { %v304_v30 = vmul.f32 %v778_v29, %v774_v21 }
 0x29f   : > { %733 = vmatmul.mubr.msk.f32.vlgmr.msra.gmra.mrb[0].mxu1 %vm307_vm4, %v304_v30 }
 0x2a0   : > { %749 = vmatprep.mubr.msk.bf16.mxu1 %vm788_vm0, %v787_v0  ;;  %746 = vmatpush3.bf16.msra.mxu1 %v769_v31 }
 0x2a1   : > { %747 = vmatprep.subr.bf16.mxu1 %v787_v0 }
 0x2a4   : > { %748 = vmatpush3.bf16.msra.mxu1 %v770_v32 }
 0x36e   : > { %v546_v33 = vpop.f32.mrb[4].mxu0 }
 0x36f   : > { %551 = vrot.lane.b32.xlu1 %v546_v33, %s794_s30  ;;  %v744_v34 = vpop.f32.mrb[5].mxu0 }
 0x372   : > { %v380_v35 = vpop.f32.mrb[0].mxu1 }
 0x373   : > { %v734_v36 = vpop.f32.mrb[1].mxu1 }
 0x3e1   : > { %v552_v37 = vpop.permute.xlu1 %551 }
 0x3e2   : > { %v554_v38 = vsel %vm217_vm1, %v380_v35, %v552_v37 }
 0x3e3   : > { %v555_v39 = vpack.c.bf16 %v554_v38, %v554_v38 }
 0x3e5   : > { %750 = vmatmul.mubr.msk.bf16.vlgmr.msra.gmra.mrb[4].mxu1 %vm579_vm5, %v555_v39 }
 0x4b8   : > { %v617_v41 = vpop.f32.mrb[4].mxu1 }
 0x4b9   : > { %v618_v43 = vadd.f32 %v708_v40, %v617_v41  ;;  %v751_v44 = vpop.f32.mrb[5].mxu1 }
 0x4ba   : > { %v620_v45 = vpop.f32.mrb[6].mxu1 }
 0x4bb   : > { %v624_v46 = vadd.f32 %v623_v42, %v618_v43  ;;  %v752_v47 = vpop.f32.mrb[7].mxu1 }
 0x4bd   : > { %626 = vst.msk [vmem:[%s209_s13] sm:$0x1f] %vm625_vm6, %v624_v46 }
 0x4be PF: > { %s14_s15 = sadd.s32 1, %s785_s15  }
 0x4bf   : > { %p11_p4 = scmp.ge.s32.totalorder %s14_s15, 4  }
 0x4c1   :  { %13 = sbr.rel (!%p11_p4) target bundleno = 1 (0x1), region = 69 }

// kernel: encode_image.17
= control target key start
LH: loop header
LB: loop body
LE: loop exit
PB: predicated region body
PF: predicated region fallthrough
CT: control target
= control target key end

     0   :  { %vm23_vm0 = vcmask 254976   ;;  %s249_s0 = inlined_call_operand.vmem [shape: f32[2,32], index: 0, kind: input, shape index: {}]   ;;  %s250_s1 = inlined_call_operand.vmem [shape: f32[1,32], index: 1, kind: input, shape index: {}]   ;;  %s251_s2 = inlined_call_operand.vmem [shape: f32[1,32], index: 2, kind: input, shape index: {}]   ;;  %s252_s3 = inlined_call_operand.vmem [shape: bf16[32,16], index: 3, kind: input, shape index: {}]   ;;  %s253_s4 = inlined_call_operand.vmem [shape: f32[1,16], index: 4, kind: input, shape index: {}]   ;;  %s254_s5 = inlined_call_operand.hbm [shape: f32[2,16], index: 5, kind: output, shape index: {}]  }
   0x1   :  { %v22_v0 = vld [vmem:[%s249_s0] sm:$0x3] }
   0x2   :  { %v24_v1 = vsel %vm23_vm0, %v22_v0, 0.0 }
   0x3   :  { %25 = vadd.xlane.f32.xlu0 %v24_v1 }
   0x4   :  { %10 = vsyncpa [#allocation3], 0  ;;  %v158_v7 = vld [vmem:[%s252_s3] sm:$0xff]   ;;  %v186_v8 = vmov 0.0   ;;  %v159_v9 = vld [vmem:[%s252_s3 + $0x8] sm:$0xff]   ;;  %vm187_vm1 = vmmov 0  }
   0x5   :  { %147 = vmatprep.subr.bf16.mxu0 %v186_v8  ;;  %151 = vmatprep.mubr.msk.bf16.mxu0 %vm187_vm1, %v186_v8  ;;  %v138_v14 = vld [vmem:[%s250_s1] ss:$0 sm:$0xff]  ;;  %vm78_vm2 = vcmask 261120   ;;  %s188_s28 = smov [#allocation2]   ;;  %vm122_vm3 = vcmask 123904  }
   0x6   :  { %148 = vmatpush3.bf16.msra.mxu0 %v158_v7  ;;  %v139_v16 = vld [vmem:[%s251_s2] ss:$0 sm:$0xff]  ;;  %s130_s29 = sshll.u32 %s188_s28, 4  ;;  %s131_s29 = int_to_ptr.vmem [resolvable:$true] %s130_s29 }
   0x7   :  { %149 = vmatprep.subr.bf16.mxu0 %v186_v8  ;;  %v140_v20 = vld [vmem:[%s253_s4] ss:$0 sm:$0xff]  ;;  %s162_s1 = scalar_lea.vmem %s131_s29, 32  ;;  %p167_p1 = scmp.lt.s32.totalorder %s131_s29, %s131_s29 }
   0x8   :  { %p163_p0 = scmp.ne.s32.totalorder %s131_s29, %s162_s1  ;;  %p168_p2 = scmp.lt.s32.totalorder %s162_s1, %s162_s1 }
   0xa   :  { %150 = vmatpush3.bf16.msra.mxu0 %v159_v9  ;;  %p169_p3 = por %p168_p2, %p167_p1 }
   0xc   :  { %p170_p4 = pnand %p169_p3, %p163_p0 }
  0x90   :  { %v26_v2 = vpop.xlane.xlu0 %25 }
  0x91   :  { %v28_v3 = vmul.f32 0.03125, %v26_v2 }
  0x93   :  { %v29_v4 = vsub.f32 %v22_v0, %v28_v3 }
  0x95   :  { %v30_v5 = vmul.f32 %v29_v4, %v29_v4 }
  0x97   :  { %v31_v6 = vsel %vm23_vm0, %v30_v5, 0.0 }
  0x98   :  { %32 = vadd.xlane.f32.xlu0 %v31_v6 }
 0x125   :  { %v33_v10 = vpop.xlane.xlu0 %32 }
 0x126   :  { %v34_v11 = vmul.f32 0.03125, %v33_v10 }
 0x128   :  { %v35_v12 = vadd.f32 1e-05, %v34_v11 }
 0x12a   :  { %160 = vrsqrt.f32 %v35_v12 }
 0x134   :  { %v161_v13 = vpop.eup %160 }
 0x135   :  { %v37_v15 = vmul.f32 %v161_v13, %v29_v4 }
 0x137   :  { %v45_v17 = vmul.f32 %v138_v14, %v37_v15 }
 0x139   :  { %v53_v18 = vadd.f32 %v139_v16, %v45_v17 }
 0x13b   :  { %v54_v19 = vpack.c.bf16 %v53_v18, %v53_v18 }
 0x13d   :  { %152 = vmatmul.mubr.msk.bf16.vlgmr.msra.gmra.mrb[0].mxu0 %vm78_vm2, %v54_v19 }
 0x210   :  { %v116_v21 = vpop.f32.mrb[0].mxu0 }
 0x211   :  { %v117_v22 = vadd.f32 %v140_v20, %v116_v21  ;;  %v153_v23 = vpop.f32.mrb[1].mxu0 }
 0x212   :  { %v119_v24 = vpop.f32.mrb[2].mxu0 }
 0x213   :  { %v154_v25 = vpop.f32.mrb[3].mxu0  ;;  %123 = vst.msk [vmem:[#allocation2] sm:$0x3] %vm122_vm3, %v117_v22 }
 0x214   :  { %173 = shalt.err (!%p170_p4)
}
 0x215   :  { %s174_s4 = scalar_lea.hbm %s254_s5, 32 }
 0x216   :  { %p175_p5 = scmp.ne.s32.totalorder %s254_s5, %s174_s4  ;;  %p178_p6 = scmp.lt.u32.totalorder %s174_s4, %s254_s5 }
 0x218   :  { %p180_p7 = pnand %p178_p6, %p175_p5 }
 0x21a   :  { %183 = shalt.err (!%p180_p7)
}
 0x21b   :  { %133 = dma.vmem_to_hbm [thread:$0]  %s131_s29, 32, %s254_s5, [#allocation3]  }
 0x21c   :  { %184 = dma.done.wait [#allocation3], 32  }
 0x21d   :  { %185 = vsyncadd [#allocation3], 4294967264 }
 0x21e   :  { %137 = vsyncpa [#allocation3], 1 }

// kernel: encode_image.13
= control target key start
LH: loop header
LB: loop body
LE: loop exit
PB: predicated region body
PF: predicated region fallthrough
CT: control target
= control target key end

     0   :  { %vm29_vm0 = vcmask 261120   ;;  %vm33_vm1 = vcmask 254976   ;;  %v362_v15 = vmov 0.0   ;;  %vm363_vm2 = vmmov 0   ;;  %s475_s0 = inlined_call_operand.vmem [shape: f32[10,32], index: 0, kind: input, shape index: {}]   ;;  %s476_s3 = inlined_call_operand.vmem [shape: bf16[32,128], index: 3, kind: input, shape index: {}]   ;;  %s477_s1 = inlined_call_operand.vmem [shape: f32[1,32], index: 1, kind: input, shape index: {}]   ;;  %s478_s2 = inlined_call_operand.vmem [shape: f32[1,32], index: 2, kind: input, shape index: {}]   ;;  %s479_s5 = inlined_call_operand.vmem [shape: bf16[128,32], index: 5, kind: input, shape index: {}]   ;;  %s480_s4 = inlined_call_operand.vmem [shape: f32[1,128], index: 4, kind: input, shape index: {}]   ;;  %s481_s6 = inlined_call_operand.vmem [shape: f32[1,32], index: 6, kind: input, shape index: {}]   ;;  %s482_s7 = inlined_call_operand.vmem [shape: f32[10,32], index: 7, kind: output, shape index: {}]  }
   0x1   :  { %v407_v0 = vld [vmem:[%s475_s0] sm:$0xff]  ;;  %v412_v1 = vld [vmem:[%s475_s0 + $0x8] sm:$0x3]  ;;  %310 = vmatprep.subr.bf16.mxu0 %v362_v15  ;;  %318 = vmatprep.subr.bf16.mxu1 %v362_v15  ;;  %v344_v36 = vld [vmem:[%s479_s5 + $0x10] sm:$0xff]  }
   0x2   :  { %v30_v2 = vsel %vm29_vm0, %v407_v0, 0.0  ;;  %v34_v3 = vsel %vm33_vm1, %v412_v1, 0.0  ;;  %v340_v14 = vld [vmem:[%s476_s3] sm:$0xff]   ;;  %v341_v16 = vld [vmem:[%s476_s3 + $0x8] sm:$0xff]   ;;  %314 = vmatprep.mubr.msk.bf16.mxu0 %vm363_vm2, %v362_v15  ;;  %334 = vmatprep.mubr.msk.bf16.mxu1 %vm363_vm2, %v362_v15  ;;  %v345_v37 = vld [vmem:[%s479_s5 + $0x18] sm:$0xff]  }
   0x3   :  { %31 = vadd.xlane.f32.xlu0 %v30_v2  ;;  %311 = vmatpush3.bf16.msra.mxu0 %v340_v14  ;;  %v281_v25 = vld [vmem:[%s477_s1] ss:$0 sm:$0xff]  ;;  %v343_v35 = vld [vmem:[%s479_s5 + $0x8] sm:$0xff]   ;;  %v348_v40 = vld [vmem:[%s479_s5 + $0x30] sm:$0xff]  }
   0x4   :  { %312 = vmatprep.subr.bf16.mxu0 %v362_v15  ;;  %v282_v29 = vld [vmem:[%s478_s2] ss:$0 sm:$0xff]  ;;  %v347_v39 = vld [vmem:[%s479_s5 + $0x28] sm:$0xff]   ;;  %v349_v41 = vld [vmem:[%s479_s5 + $0x38] sm:$0xff]  }
   0x5   :  { %v342_v34 = vld [vmem:[%s479_s5] sm:$0xff]  }
   0x6   :  { %319 = vmatpush3.bf16.msra.mxu1 %v342_v34  ;;  %v346_v38 = vld [vmem:[%s479_s5 + $0x20] sm:$0xff]  }
   0x7   :  { %35 = vadd.xlane.f32.xlu0 %v34_v3  ;;  %313 = vmatpush3.bf16.msra.mxu0 %v341_v16  ;;  %v283_v42 = vld [vmem:[%s480_s4] ss:$0 sm:$0xff] }
   0x8   :  { %320 = vmatprep.subr.bf16.mxu1 %v362_v15  ;;  %v289_v62 = vld [vmem:[%s481_s6] ss:$0 sm:$0xff] }
   0xa   :  { %321 = vmatpush3.bf16.msra.mxu1 %v343_v35 }
   0xb   :  { %322 = vmatprep.subr.bf16.mxu1 %v362_v15 }
   0xe   :  { %323 = vmatpush3.bf16.msra.mxu1 %v344_v36 }
   0xf   :  { %324 = vmatprep.subr.bf16.mxu1 %v362_v15 }
  0x12   :  { %325 = vmatpush3.bf16.msra.mxu1 %v345_v37 }
  0x13   :  { %326 = vmatprep.subr.bf16.mxu1 %v362_v15 }
  0x16   :  { %327 = vmatpush3.bf16.msra.mxu1 %v346_v38 }
  0x17   :  { %328 = vmatprep.subr.bf16.mxu1 %v362_v15 }
  0x1a   :  { %329 = vmatpush3.bf16.msra.mxu1 %v347_v39 }
  0x1b   :  { %330 = vmatprep.subr.bf16.mxu1 %v362_v15 }
  0x1e   :  { %331 = vmatpush3.bf16.msra.mxu1 %v348_v40 }
  0x1f   :  { %332 = vmatprep.subr.bf16.mxu1 %v362_v15 }
  0x22   :  { %333 = vmatpush3.bf16.msra.mxu1 %v349_v41 }
  0x90   :  { %v32_v4 = vpop.xlane.xlu0 %31 }
  0x91   :  { %v38_v5 = vmul.f32 0.03125, %v32_v4 }
  0x93   :  { %v40_v6 = vsub.f32 %v407_v0, %v38_v5 }
  0x94   :  { %v36_v7 = vpop.xlane.xlu0 %35 }
  0x95   :  { %v39_v8 = vmul.f32 0.03125, %v36_v7  ;;  %v42_v9 = vmul.f32 %v40_v6, %v40_v6 }
  0x97   :  { %v41_v10 = vsub.f32 %v412_v1, %v39_v8  ;;  %v44_v11 = vsel %vm29_vm0, %v42_v9, 0.0 }
  0x98   :  { %45 = vadd.xlane.f32.xlu1 %v44_v11 }
  0x99   :  { %v43_v12 = vmul.f32 %v41_v10, %v41_v10 }
  0x9b   :  { %v47_v13 = vsel %vm33_vm1, %v43_v12, 0.0 }
  0x9c   :  { %48 = vadd.xlane.f32.xlu1 %v47_v13 }
 0x125   :  { %v46_v17 = vpop.xlane.xlu1 %45 }
 0x126   :  { %v50_v18 = vmul.f32 0.03125, %v46_v17 }
 0x128   :  { %v52_v19 = vadd.f32 1e-05, %v50_v18 }
 0x129   :  { %v49_v20 = vpop.xlane.xlu1 %48 }
 0x12a   :  { %350 = vrsqrt.f32 %v52_v19  ;;  %v51_v21 = vmul.f32 0.03125, %v49_v20 }
 0x12c   :  { %v53_v22 = vadd.f32 1e-05, %v51_v21 }
 0x12e   :  { %352 = vrsqrt.f32 %v53_v22 }
 0x134   :  { %v351_v23 = vpop.eup %350 }
 0x135   :  { %v56_v24 = vmul.f32 %v351_v23, %v40_v6 }
 0x137   :  { %v65_v28 = vmul.f32 %v281_v25, %v56_v24 }
 0x138   :  { %v353_v26 = vpop.eup %352 }
 0x139   :  { %v57_v27 = vmul.f32 %v353_v26, %v41_v10  ;;  %v74_v31 = vadd.f32 %v282_v29, %v65_v28 }
 0x13b   :  { %v66_v30 = vmul.f32 %v281_v25, %v57_v27 }
 0x13d   :  { %v75_v32 = vadd.f32 %v282_v29, %v66_v30 }
 0x13f   :  { %v76_v33 = vpack.c.bf16 %v75_v32, %v74_v31 }
 0x141   :  { %315 = vmatmul.mubr.msk.bf16.vlgmr.msra.gmra.mrb[0].mxu0 %vm29_vm0, %v76_v33 }
 0x214   :  { %v137_v43 = vpop.f32.mrb[0].mxu0 }
 0x215   :  { %v138_v44 = vadd.f32 %v283_v42, %v137_v43  ;;  %v316_v45 = vpop.f32.mrb[1].mxu0 }
 0x216   :  { %v140_v46 = vpop.f32.mrb[2].mxu0 }
 0x217   :  { %v287_v47 = vmul.f32 -1.702, %v138_v44  ;;  %v141_v48 = vadd.f32 %v283_v42, %v140_v46  ;;  %v317_v49 = vpop.f32.mrb[3].mxu0 }
 0x219   :  { %v148_v50 = vmul.f32 1.442695, %v287_v47  ;;  %v288_v51 = vmul.f32 -1.702, %v141_v48 }
 0x21b   :  { %354 = vpow2.f32 %v148_v50  ;;  %v150_v52 = vmul.f32 1.442695, %v288_v51 }
 0x21d   :  { %356 = vpow2.f32 %v150_v52 }
 0x225   :  { %v355_v53 = vpop.eup %354 }
 0x226   :  { %v152_v54 = vadd.f32 1.0, %v355_v53 }
 0x227   :  { %v357_v55 = vpop.eup %356 }
 0x228   :  { %358 = vrcp.f32 %v152_v54  ;;  %v153_v56 = vadd.f32 1.0, %v357_v55 }
 0x22a   :  { %360 = vrcp.f32 %v153_v56 }
 0x232   :  { %v359_v57 = vpop.eup %358 }
 0x233   :  { %v158_v59 = vmul.f32 %v359_v57, %v138_v44 }
 0x234   :  { %v361_v58 = vpop.eup %360 }
 0x235   :  { %v159_v60 = vmul.f32 %v361_v58, %v141_v48 }
 0x237   :  { %v160_v61 = vpack.c.bf16 %v159_v60, %v158_v59 }
 0x239   :  { %335 = vmatmul.mubr.bf16.vlgmr.msra.gmra.mrb[0].mxu1 %v160_v61 }
 0x30c   :  { %v266_v63 = vpop.f32.mrb[0].mxu1 }
 0x30d   :  { %v267_v2 = vadd.f32 %v289_v62, %v266_v63  ;;  %v336_v3 = vpop.f32.mrb[1].mxu1 }
 0x30e   :  { %v269_v4 = vpop.f32.mrb[2].mxu1 }
 0x30f   :  { %v273_v5 = vadd.f32 %v267_v2, %v407_v0  ;;  %v270_v6 = vadd.f32 %v289_v62, %v269_v4  ;;  %v337_v7 = vpop.f32.mrb[3].mxu1 }
 0x311   :  { %275 = vst.msk [vmem:[%s482_s7] sm:$0xff] %vm29_vm0, %v273_v5  ;;  %v274_v8 = vadd.f32 %v270_v6, %v412_v1 }
 0x313   :  { %276 = vst.msk [vmem:[%s482_s7 + $0x8] sm:$0x3] %vm33_vm1, %v274_v8 }

</bundles_post_ra>
